<compile_context>
chip_gen: v7x
topology: tpu7x:2x2x1
jax: 0.10.0
libtpu: 0.0.40
codegen_flags: <defaults>
</compile_context>

<pallas_src>
import math
import jax
import jax.numpy as jnp
from jax.experimental import pallas as pl
from jax.experimental.pallas import tpu as pltpu


# -----------------------------------------------------------------------------
# Pallas kernel: single-layer LSTM recurrence + final Linear head.
# Inputs are fully resident in VMEM; no grid / tiling needed.
# -----------------------------------------------------------------------------
def lstm_m_kernel(pre_ref,    # (T*Bp, 4H) f32  : x_t @ W_ih^T + (b_ih+b_hh), time-major
                  h0_ref,     # (Bp, H)   f32  : initial hidden state (batch-padded)
                  c0_ref,     # (Bp, H)   f32  : initial cell state  (batch-padded)
                  whh_ref,    # (H, 4H)   bf16 : W_hh^T
                  wout_ref,   # (H, Pp)   bf16 : W_out^T, prediction dim padded to 128
                  bout_ref,   # (1, Pp)   f32  : b_out, padded
                  out_ref):   # (Bp, Pp)  f32  : prediction (padded)
    Bp, H = h0_ref.shape
    T = pre_ref.shape[0] // Bp

    h = h0_ref[...]            # (8,128) f32 = 1 vreg -> cheap to keep live
    c = c0_ref[...]

    def sigmoid(x):
        # exact sigmoid via tanh: one EUP push + one VPU fma per gate
        return 0.5 * (jnp.tanh(0.5 * x) + 1.0)

    # Fully-unrolled time loop (T=8): only h @ W_hh^T is on the serial path.
    for t in range(T):
        # NOTE: whh_ref is read inside the loop each step on purpose — hoisting
        # the 128 KiB bf16 operand as a Python value across the unrolled loop
        # would pin ~32 vregs and risk spill churn; vld slots have slack.
        gates = (pre_ref[t * Bp:(t + 1) * Bp, :]
                 + jnp.dot(h.astype(jnp.bfloat16), whh_ref[...],
                           preferred_element_type=jnp.float32))       # (Bp,4H) f32
        # H == 128 -> each gate slice is a whole 128-lane block (free slicing).
        i_g = sigmoid(gates[:, 0 * H:1 * H])
        f_g = sigmoid(gates[:, 1 * H:2 * H])
        g_g = jnp.tanh(gates[:, 2 * H:3 * H])
        o_g = sigmoid(gates[:, 3 * H:4 * H])
        # Padded batch rows (B..Bp) carry garbage but are never reduced over
        # and are sliced off in the wrapper.
        c = f_g * c + i_g * g_g
        h = o_g * jnp.tanh(c)

    # Output head on the last timestep's hidden state (lane-dense Pp=128 store).
    out_ref[...] = (jnp.dot(h.astype(jnp.bfloat16), wout_ref[...],
                            preferred_element_type=jnp.float32)
                    + bout_ref[...])


# -----------------------------------------------------------------------------
# Parameter init matching the PyTorch module's shapes / init bounds.
# -----------------------------------------------------------------------------
def init_params(key, feature_dim, hidden_dim, predicted_len):
    """nn.LSTM default init U(-1/sqrt(H), 1/sqrt(H)); linear_weights_init on the
    head gives U(-1/sqrt(in_features), 1/sqrt(in_features)) (same bound here)."""
    k_lstm = 1.0 / math.sqrt(hidden_dim)
    k_lin = 1.0 / math.sqrt(hidden_dim)
    ks = jax.random.split(key, 6)
    w_ih = jax.random.uniform(ks[0], (4 * hidden_dim, feature_dim),
                              jnp.float32, -k_lstm, k_lstm)
    w_hh = jax.random.uniform(ks[1], (4 * hidden_dim, hidden_dim),
                              jnp.float32, -k_lstm, k_lstm)
    b_ih = jax.random.uniform(ks[2], (4 * hidden_dim,),
                              jnp.float32, -k_lstm, k_lstm)
    b_hh = jax.random.uniform(ks[3], (4 * hidden_dim,),
                              jnp.float32, -k_lstm, k_lstm)
    w_out = jax.random.uniform(ks[4], (predicted_len, hidden_dim),
                               jnp.float32, -k_lin, k_lin)
    b_out = jax.random.uniform(ks[5], (predicted_len,),
                               jnp.float32, -k_lin, k_lin)
    return dict(w_ih=w_ih, w_hh=w_hh, b_ih=b_ih, b_hh=b_hh,
                w_out=w_out, b_out=b_out)


# -----------------------------------------------------------------------------
# Wrapper: layout plumbing + pallas_call
# -----------------------------------------------------------------------------
def lstm_m_forward(node_t, params, h0, c0):
    """node_t: (B, T, F) f32, batch_first like the PyTorch module.
    h0/c0: (B, H). Returns (B, predicted_len)."""
    B, T, F = node_t.shape
    H = h0.shape[1]
    P = params["w_out"].shape[0]
    Bp = ((B + 7) // 8) * 8                 # f32 sublane multiple
    Pp = max(((P + 127) // 128) * 128, 128)  # lane-dense output block

    # time-major + batch pad, flattened so the input projection is one matmul
    x_tm = jnp.transpose(node_t, (1, 0, 2))               # (T, B, F)
    x_tm = jnp.pad(x_tm, ((0, 0), (0, Bp - B), (0, 0)))   # (T, Bp, F)
    x2 = x_tm.reshape(T * Bp, F)                          # (T*Bp, F)

    wih_t = jnp.transpose(params["w_ih"])                 # (F, 4H)
    b = (params["b_ih"] + params["b_hh"]).reshape(1, 4 * H)
    # Input projection hoisted into XLA: off the serial recurrence, and avoids
    # a lane-masked K=4 MXU pass inside the kernel.
    pre = jnp.dot(x2, wih_t, precision=jax.lax.Precision.HIGHEST) + b  # (T*Bp,4H)

    h0p = jnp.pad(h0, ((0, Bp - B), (0, 0)))              # (Bp, H)
    c0p = jnp.pad(c0, ((0, Bp - B), (0, 0)))              # (Bp, H)

    whh_bf16 = jnp.transpose(params["w_hh"]).astype(jnp.bfloat16)   # (H, 4H)
    wout_p = jnp.pad(jnp.transpose(params["w_out"]),
                     ((0, 0), (0, Pp - P))).astype(jnp.bfloat16)    # (H, Pp)
    bout_p = jnp.pad(params["b_out"], (0, Pp - P)).reshape(1, Pp)   # (1, Pp)

    # TODO(synk): for batched/production use, add a leading parallel grid axis
    # over batch tiles so v7x's second TensorCore gets work; at B=2 it's moot.
    vmem = pl.BlockSpec(memory_space=pltpu.MemorySpace.VMEM)
    out_p = pl.pallas_call(
        lstm_m_kernel,
        out_shape=jax.ShapeDtypeStruct((Bp, Pp), jnp.float32),
        in_specs=[vmem] * 6,
        out_specs=vmem,
    )(pre, h0p, c0p, whh_bf16, wout_p, bout_p)
    return out_p[:B, :P]


# -----------------------------------------------------------------------------
# Pure-JAX references
# -----------------------------------------------------------------------------
def lstm_m_reference_matched(node_t, params, h0, c0):
    """Mirrors the kernel's numerics: bf16 operands at the MXU boundary for the
    recurrent and output matmuls, f32 accumulation and elementwise math."""
    H = h0.shape[1]
    hp = jax.lax.Precision.HIGHEST
    wih_t = params["w_ih"].T
    whh_bf16 = params["w_hh"].T.astype(jnp.bfloat16)
    wout_bf16 = params["w_out"].T.astype(jnp.bfloat16)
    b = params["b_ih"] + params["b_hh"]
    h, c = h0, c0
    for t in range(node_t.shape[1]):
        pre = jnp.dot(node_t[:, t, :], wih_t, precision=hp) + b
        g = pre + jnp.dot(h.astype(jnp.bfloat16), whh_bf16,
                          preferred_element_type=jnp.float32)
        i = jax.nn.sigmoid(g[:, 0 * H:1 * H])
        f = jax.nn.sigmoid(g[:, 1 * H:2 * H])
        gg = jnp.tanh(g[:, 2 * H:3 * H])
        o = jax.nn.sigmoid(g[:, 3 * H:4 * H])
        c = f * c + i * gg
        h = o * jnp.tanh(c)
    return (jnp.dot(h.astype(jnp.bfloat16), wout_bf16,
                    preferred_element_type=jnp.float32) + params["b_out"])


def lstm_m_reference_f32(node_t, params, h0, c0):
    """Full-f32 reference (sanity check on the bf16 MXU-boundary casts)."""
    H = h0.shape[1]
    hp = jax.lax.Precision.HIGHEST
    wih_t = params["w_ih"].T
    whh_t = params["w_hh"].T
    b = params["b_ih"] + params["b_hh"]
    h, c = h0, c0
    for t in range(node_t.shape[1]):
        g = (jnp.dot(node_t[:, t, :], wih_t, precision=hp)
             + jnp.dot(h, whh_t, precision=hp) + b)
        i = jax.nn.sigmoid(g[:, 0 * H:1 * H])
        f = jax.nn.sigmoid(g[:, 1 * H:2 * H])
        gg = jnp.tanh(g[:, 2 * H:3 * H])
        o = jax.nn.sigmoid(g[:, 3 * H:4 * H])
        c = f * c + i * gg
        h = o * jnp.tanh(c)
    return jnp.dot(h, params["w_out"].T, precision=hp) + params["b_out"]


if __name__ == "__main__":
    # Shapes consistent with the module's forward:
    # node_t: (batch=2, seq=8, feature_dim=4); hidden=128 (module default);
    # predicted_len=8.
    B, T, F = 2, 8, 4
    HIDDEN = 128
    PRED = 8

    key = jax.random.PRNGKey(0)
    k_x, k_h, k_c, k_p = jax.random.split(key, 4)

    node_t = jax.random.normal(k_x, (B, T, F), jnp.float32)
    # The PyTorch forward draws torch.randn h0/c0 per call -> deterministic
    # normal draws here (random initial state semantics preserved).
    h0 = jax.random.normal(k_h, (B, HIDDEN), jnp.float32)
    c0 = jax.random.normal(k_c, (B, HIDDEN), jnp.float32)
    params = init_params(k_p, F, HIDDEN, PRED)

    out = lstm_m_forward(node_t, params, h0, c0)
    out = jax.block_until_ready(out)

    assert out.shape == (B, PRED), out.shape

    ref_matched = lstm_m_reference_matched(node_t, params, h0, c0)
    assert jnp.allclose(out, ref_matched, atol=1e-4, rtol=1e-4), \
        f"max err vs matched ref {jnp.max(jnp.abs(out - ref_matched))}"

    ref_f32 = lstm_m_reference_f32(node_t, params, h0, c0)
    assert jnp.allclose(out, ref_f32, atol=0.25, rtol=0.25), \
        f"max err vs f32 ref {jnp.max(jnp.abs(out - ref_f32))}"

    print("KERNEL_OK")
</pallas_src>

<mosaic_0001>
module attributes {stable_mosaic.version = 11 : i64} {
  func.func @lstm_m_kernel(%arg0: memref<64x512xf32, #tpu.memory_space<vmem>>, %arg1: memref<8x128xf32, #tpu.memory_space<vmem>>, %arg2: memref<8x128xf32, #tpu.memory_space<vmem>>, %arg3: memref<128x512xbf16, #tpu.memory_space<vmem>>, %arg4: memref<128x128xbf16, #tpu.memory_space<vmem>>, %arg5: memref<1x128xf32, #tpu.memory_space<vmem>>, %arg6: memref<8x128xf32, #tpu.memory_space<vmem>>) attributes {dimension_semantics = [], scalar_prefetch = 0 : i64, scratch_operands = 0 : i64, tpu.core_type = #tpu.core_type<tc>} {
    %c0 = arith.constant 0 : index
    %c0_0 = arith.constant 0 : index
    %0 = vector.load %arg1[%c0, %c0_0] : memref<8x128xf32, #tpu.memory_space<vmem>>, vector<8x128xf32>
    %c0_1 = arith.constant 0 : index
    %c0_2 = arith.constant 0 : index
    %1 = vector.load %arg2[%c0_1, %c0_2] : memref<8x128xf32, #tpu.memory_space<vmem>>, vector<8x128xf32>
    %c0_3 = arith.constant 0 : index
    %c0_4 = arith.constant 0 : index
    %2 = vector.load %arg0[%c0_3, %c0_4] : memref<64x512xf32, #tpu.memory_space<vmem>>, vector<8x512xf32>
    %3 = arith.truncf %0 : vector<8x128xf32> to vector<8x128xbf16>
    %c0_5 = arith.constant 0 : index
    %c0_6 = arith.constant 0 : index
    %4 = vector.load %arg3[%c0_5, %c0_6] : memref<128x512xbf16, #tpu.memory_space<vmem>>, vector<128x512xbf16>
    %cst = arith.constant dense<0.000000e+00> : vector<8x512xf32>
    %5 = tpu.matmul %3, %4, %cst {dimension_numbers = #tpu.dot_dimension_numbers<[1], [0], [0], [1], [0, 0, 1, 1], [], []>} : vector<8x128xbf16>, vector<128x512xbf16>, vector<8x512xf32> -> vector<8x512xf32>
    %6 = arith.addf %2, %5 : vector<8x512xf32>
    %7 = vector.extract_strided_slice %6 {offsets = [0, 0], sizes = [8, 128], strides = [1, 1]} : vector<8x512xf32> to vector<8x128xf32>
    %cst_7 = arith.constant 5.000000e-01 : f32
    %8 = vector.broadcast %cst_7 : f32 to vector<8x128xf32>
    %9 = arith.mulf %8, %7 : vector<8x128xf32>
    %10 = math.tanh %9 : vector<8x128xf32>
    %cst_8 = arith.constant 1.000000e+00 : f32
    %11 = vector.broadcast %cst_8 : f32 to vector<8x128xf32>
    %12 = arith.addf %10, %11 : vector<8x128xf32>
    %cst_9 = arith.constant 5.000000e-01 : f32
    %13 = vector.broadcast %cst_9 : f32 to vector<8x128xf32>
    %14 = arith.mulf %13, %12 : vector<8x128xf32>
    %15 = vector.extract_strided_slice %6 {offsets = [0, 128], sizes = [8, 128], strides = [1, 1]} : vector<8x512xf32> to vector<8x128xf32>
    %cst_10 = arith.constant 5.000000e-01 : f32
    %16 = vector.broadcast %cst_10 : f32 to vector<8x128xf32>
    %17 = arith.mulf %16, %15 : vector<8x128xf32>
    %18 = math.tanh %17 : vector<8x128xf32>
    %cst_11 = arith.constant 1.000000e+00 : f32
    %19 = vector.broadcast %cst_11 : f32 to vector<8x128xf32>
    %20 = arith.addf %18, %19 : vector<8x128xf32>
    %cst_12 = arith.constant 5.000000e-01 : f32
    %21 = vector.broadcast %cst_12 : f32 to vector<8x128xf32>
    %22 = arith.mulf %21, %20 : vector<8x128xf32>
    %23 = vector.extract_strided_slice %6 {offsets = [0, 256], sizes = [8, 128], strides = [1, 1]} : vector<8x512xf32> to vector<8x128xf32>
    %24 = math.tanh %23 : vector<8x128xf32>
    %25 = vector.extract_strided_slice %6 {offsets = [0, 384], sizes = [8, 128], strides = [1, 1]} : vector<8x512xf32> to vector<8x128xf32>
    %cst_13 = arith.constant 5.000000e-01 : f32
    %26 = vector.broadcast %cst_13 : f32 to vector<8x128xf32>
    %27 = arith.mulf %26, %25 : vector<8x128xf32>
    %28 = math.tanh %27 : vector<8x128xf32>
    %cst_14 = arith.constant 1.000000e+00 : f32
    %29 = vector.broadcast %cst_14 : f32 to vector<8x128xf32>
    %30 = arith.addf %28, %29 : vector<8x128xf32>
    %cst_15 = arith.constant 5.000000e-01 : f32
    %31 = vector.broadcast %cst_15 : f32 to vector<8x128xf32>
    %32 = arith.mulf %31, %30 : vector<8x128xf32>
    %33 = arith.mulf %22, %1 : vector<8x128xf32>
    %34 = arith.mulf %14, %24 : vector<8x128xf32>
    %35 = arith.addf %33, %34 : vector<8x128xf32>
    %36 = math.tanh %35 : vector<8x128xf32>
    %37 = arith.mulf %32, %36 : vector<8x128xf32>
    %c8 = arith.constant 8 : index
    %c0_16 = arith.constant 0 : index
    %38 = vector.load %arg0[%c8, %c0_16] : memref<64x512xf32, #tpu.memory_space<vmem>>, vector<8x512xf32>
    %39 = arith.truncf %37 : vector<8x128xf32> to vector<8x128xbf16>
    %c0_17 = arith.constant 0 : index
    %c0_18 = arith.constant 0 : index
    %40 = vector.load %arg3[%c0_17, %c0_18] : memref<128x512xbf16, #tpu.memory_space<vmem>>, vector<128x512xbf16>
    %cst_19 = arith.constant dense<0.000000e+00> : vector<8x512xf32>
    %41 = tpu.matmul %39, %40, %cst_19 {dimension_numbers = #tpu.dot_dimension_numbers<[1], [0], [0], [1], [0, 0, 1, 1], [], []>} : vector<8x128xbf16>, vector<128x512xbf16>, vector<8x512xf32> -> vector<8x512xf32>
    %42 = arith.addf %38, %41 : vector<8x512xf32>
    %43 = vector.extract_strided_slice %42 {offsets = [0, 0], sizes = [8, 128], strides = [1, 1]} : vector<8x512xf32> to vector<8x128xf32>
    %cst_20 = arith.constant 5.000000e-01 : f32
    %44 = vector.broadcast %cst_20 : f32 to vector<8x128xf32>
    %45 = arith.mulf %44, %43 : vector<8x128xf32>
    %46 = math.tanh %45 : vector<8x128xf32>
    %cst_21 = arith.constant 1.000000e+00 : f32
    %47 = vector.broadcast %cst_21 : f32 to vector<8x128xf32>
    %48 = arith.addf %46, %47 : vector<8x128xf32>
    %cst_22 = arith.constant 5.000000e-01 : f32
    %49 = vector.broadcast %cst_22 : f32 to vector<8x128xf32>
    %50 = arith.mulf %49, %48 : vector<8x128xf32>
    %51 = vector.extract_strided_slice %42 {offsets = [0, 128], sizes = [8, 128], strides = [1, 1]} : vector<8x512xf32> to vector<8x128xf32>
    %cst_23 = arith.constant 5.000000e-01 : f32
    %52 = vector.broadcast %cst_23 : f32 to vector<8x128xf32>
    %53 = arith.mulf %52, %51 : vector<8x128xf32>
    %54 = math.tanh %53 : vector<8x128xf32>
    %cst_24 = arith.constant 1.000000e+00 : f32
    %55 = vector.broadcast %cst_24 : f32 to vector<8x128xf32>
    %56 = arith.addf %54, %55 : vector<8x128xf32>
    %cst_25 = arith.constant 5.000000e-01 : f32
    %57 = vector.broadcast %cst_25 : f32 to vector<8x128xf32>
    %58 = arith.mulf %57, %56 : vector<8x128xf32>
    %59 = vector.extract_strided_slice %42 {offsets = [0, 256], sizes = [8, 128], strides = [1, 1]} : vector<8x512xf32> to vector<8x128xf32>
    %60 = math.tanh %59 : vector<8x128xf32>
    %61 = vector.extract_strided_slice %42 {offsets = [0, 384], sizes = [8, 128], strides = [1, 1]} : vector<8x512xf32> to vector<8x128xf32>
    %cst_26 = arith.constant 5.000000e-01 : f32
    %62 = vector.broadcast %cst_26 : f32 to vector<8x128xf32>
    %63 = arith.mulf %62, %61 : vector<8x128xf32>
    %64 = math.tanh %63 : vector<8x128xf32>
    %cst_27 = arith.constant 1.000000e+00 : f32
    %65 = vector.broadcast %cst_27 : f32 to vector<8x128xf32>
    %66 = arith.addf %64, %65 : vector<8x128xf32>
    %cst_28 = arith.constant 5.000000e-01 : f32
    %67 = vector.broadcast %cst_28 : f32 to vector<8x128xf32>
    %68 = arith.mulf %67, %66 : vector<8x128xf32>
    %69 = arith.mulf %58, %35 : vector<8x128xf32>
    %70 = arith.mulf %50, %60 : vector<8x128xf32>
    %71 = arith.addf %69, %70 : vector<8x128xf32>
    %72 = math.tanh %71 : vector<8x128xf32>
    %73 = arith.mulf %68, %72 : vector<8x128xf32>
    %c16 = arith.constant 16 : index
    %c0_29 = arith.constant 0 : index
    %74 = vector.load %arg0[%c16, %c0_29] : memref<64x512xf32, #tpu.memory_space<vmem>>, vector<8x512xf32>
    %75 = arith.truncf %73 : vector<8x128xf32> to vector<8x128xbf16>
    %c0_30 = arith.constant 0 : index
    %c0_31 = arith.constant 0 : index
    %76 = vector.load %arg3[%c0_30, %c0_31] : memref<128x512xbf16, #tpu.memory_space<vmem>>, vector<128x512xbf16>
    %cst_32 = arith.constant dense<0.000000e+00> : vector<8x512xf32>
    %77 = tpu.matmul %75, %76, %cst_32 {dimension_numbers = #tpu.dot_dimension_numbers<[1], [0], [0], [1], [0, 0, 1, 1], [], []>} : vector<8x128xbf16>, vector<128x512xbf16>, vector<8x512xf32> -> vector<8x512xf32>
    %78 = arith.addf %74, %77 : vector<8x512xf32>
    %79 = vector.extract_strided_slice %78 {offsets = [0, 0], sizes = [8, 128], strides = [1, 1]} : vector<8x512xf32> to vector<8x128xf32>
    %cst_33 = arith.constant 5.000000e-01 : f32
    %80 = vector.broadcast %cst_33 : f32 to vector<8x128xf32>
    %81 = arith.mulf %80, %79 : vector<8x128xf32>
    %82 = math.tanh %81 : vector<8x128xf32>
    %cst_34 = arith.constant 1.000000e+00 : f32
    %83 = vector.broadcast %cst_34 : f32 to vector<8x128xf32>
    %84 = arith.addf %82, %83 : vector<8x128xf32>
    %cst_35 = arith.constant 5.000000e-01 : f32
    %85 = vector.broadcast %cst_35 : f32 to vector<8x128xf32>
    %86 = arith.mulf %85, %84 : vector<8x128xf32>
    %87 = vector.extract_strided_slice %78 {offsets = [0, 128], sizes = [8, 128], strides = [1, 1]} : vector<8x512xf32> to vector<8x128xf32>
    %cst_36 = arith.constant 5.000000e-01 : f32
    %88 = vector.broadcast %cst_36 : f32 to vector<8x128xf32>
    %89 = arith.mulf %88, %87 : vector<8x128xf32>
    %90 = math.tanh %89 : vector<8x128xf32>
    %cst_37 = arith.constant 1.000000e+00 : f32
    %91 = vector.broadcast %cst_37 : f32 to vector<8x128xf32>
    %92 = arith.addf %90, %91 : vector<8x128xf32>
    %cst_38 = arith.constant 5.000000e-01 : f32
    %93 = vector.broadcast %cst_38 : f32 to vector<8x128xf32>
    %94 = arith.mulf %93, %92 : vector<8x128xf32>
    %95 = vector.extract_strided_slice %78 {offsets = [0, 256], sizes = [8, 128], strides = [1, 1]} : vector<8x512xf32> to vector<8x128xf32>
    %96 = math.tanh %95 : vector<8x128xf32>
    %97 = vector.extract_strided_slice %78 {offsets = [0, 384], sizes = [8, 128], strides = [1, 1]} : vector<8x512xf32> to vector<8x128xf32>
    %cst_39 = arith.constant 5.000000e-01 : f32
    %98 = vector.broadcast %cst_39 : f32 to vector<8x128xf32>
    %99 = arith.mulf %98, %97 : vector<8x128xf32>
    %100 = math.tanh %99 : vector<8x128xf32>
    %cst_40 = arith.constant 1.000000e+00 : f32
    %101 = vector.broadcast %cst_40 : f32 to vector<8x128xf32>
    %102 = arith.addf %100, %101 : vector<8x128xf32>
    %cst_41 = arith.constant 5.000000e-01 : f32
    %103 = vector.broadcast %cst_41 : f32 to vector<8x128xf32>
    %104 = arith.mulf %103, %102 : vector<8x128xf32>
    %105 = arith.mulf %94, %71 : vector<8x128xf32>
    %106 = arith.mulf %86, %96 : vector<8x128xf32>
    %107 = arith.addf %105, %106 : vector<8x128xf32>
    %108 = math.tanh %107 : vector<8x128xf32>
    %109 = arith.mulf %104, %108 : vector<8x128xf32>
    %c24 = arith.constant 24 : index
    %c0_42 = arith.constant 0 : index
    %110 = vector.load %arg0[%c24, %c0_42] : memref<64x512xf32, #tpu.memory_space<vmem>>, vector<8x512xf32>
    %111 = arith.truncf %109 : vector<8x128xf32> to vector<8x128xbf16>
    %c0_43 = arith.constant 0 : index
    %c0_44 = arith.constant 0 : index
    %112 = vector.load %arg3[%c0_43, %c0_44] : memref<128x512xbf16, #tpu.memory_space<vmem>>, vector<128x512xbf16>
    %cst_45 = arith.constant dense<0.000000e+00> : vector<8x512xf32>
    %113 = tpu.matmul %111, %112, %cst_45 {dimension_numbers = #tpu.dot_dimension_numbers<[1], [0], [0], [1], [0, 0, 1, 1], [], []>} : vector<8x128xbf16>, vector<128x512xbf16>, vector<8x512xf32> -> vector<8x512xf32>
    %114 = arith.addf %110, %113 : vector<8x512xf32>
    %115 = vector.extract_strided_slice %114 {offsets = [0, 0], sizes = [8, 128], strides = [1, 1]} : vector<8x512xf32> to vector<8x128xf32>
    %cst_46 = arith.constant 5.000000e-01 : f32
    %116 = vector.broadcast %cst_46 : f32 to vector<8x128xf32>
    %117 = arith.mulf %116, %115 : vector<8x128xf32>
    %118 = math.tanh %117 : vector<8x128xf32>
    %cst_47 = arith.constant 1.000000e+00 : f32
    %119 = vector.broadcast %cst_47 : f32 to vector<8x128xf32>
    %120 = arith.addf %118, %119 : vector<8x128xf32>
    %cst_48 = arith.constant 5.000000e-01 : f32
    %121 = vector.broadcast %cst_48 : f32 to vector<8x128xf32>
    %122 = arith.mulf %121, %120 : vector<8x128xf32>
    %123 = vector.extract_strided_slice %114 {offsets = [0, 128], sizes = [8, 128], strides = [1, 1]} : vector<8x512xf32> to vector<8x128xf32>
    %cst_49 = arith.constant 5.000000e-01 : f32
    %124 = vector.broadcast %cst_49 : f32 to vector<8x128xf32>
    %125 = arith.mulf %124, %123 : vector<8x128xf32>
    %126 = math.tanh %125 : vector<8x128xf32>
    %cst_50 = arith.constant 1.000000e+00 : f32
    %127 = vector.broadcast %cst_50 : f32 to vector<8x128xf32>
    %128 = arith.addf %126, %127 : vector<8x128xf32>
    %cst_51 = arith.constant 5.000000e-01 : f32
    %129 = vector.broadcast %cst_51 : f32 to vector<8x128xf32>
    %130 = arith.mulf %129, %128 : vector<8x128xf32>
    %131 = vector.extract_strided_slice %114 {offsets = [0, 256], sizes = [8, 128], strides = [1, 1]} : vector<8x512xf32> to vector<8x128xf32>
    %132 = math.tanh %131 : vector<8x128xf32>
    %133 = vector.extract_strided_slice %114 {offsets = [0, 384], sizes = [8, 128], strides = [1, 1]} : vector<8x512xf32> to vector<8x128xf32>
    %cst_52 = arith.constant 5.000000e-01 : f32
    %134 = vector.broadcast %cst_52 : f32 to vector<8x128xf32>
    %135 = arith.mulf %134, %133 : vector<8x128xf32>
    %136 = math.tanh %135 : vector<8x128xf32>
    %cst_53 = arith.constant 1.000000e+00 : f32
    %137 = vector.broadcast %cst_53 : f32 to vector<8x128xf32>
    %138 = arith.addf %136, %137 : vector<8x128xf32>
    %cst_54 = arith.constant 5.000000e-01 : f32
    %139 = vector.broadcast %cst_54 : f32 to vector<8x128xf32>
    %140 = arith.mulf %139, %138 : vector<8x128xf32>
    %141 = arith.mulf %130, %107 : vector<8x128xf32>
    %142 = arith.mulf %122, %132 : vector<8x128xf32>
    %143 = arith.addf %141, %142 : vector<8x128xf32>
    %144 = math.tanh %143 : vector<8x128xf32>
    %145 = arith.mulf %140, %144 : vector<8x128xf32>
    %c32 = arith.constant 32 : index
    %c0_55 = arith.constant 0 : index
    %146 = vector.load %arg0[%c32, %c0_55] : memref<64x512xf32, #tpu.memory_space<vmem>>, vector<8x512xf32>
    %147 = arith.truncf %145 : vector<8x128xf32> to vector<8x128xbf16>
    %c0_56 = arith.constant 0 : index
    %c0_57 = arith.constant 0 : index
    %148 = vector.load %arg3[%c0_56, %c0_57] : memref<128x512xbf16, #tpu.memory_space<vmem>>, vector<128x512xbf16>
    %cst_58 = arith.constant dense<0.000000e+00> : vector<8x512xf32>
    %149 = tpu.matmul %147, %148, %cst_58 {dimension_numbers = #tpu.dot_dimension_numbers<[1], [0], [0], [1], [0, 0, 1, 1], [], []>} : vector<8x128xbf16>, vector<128x512xbf16>, vector<8x512xf32> -> vector<8x512xf32>
    %150 = arith.addf %146, %149 : vector<8x512xf32>
    %151 = vector.extract_strided_slice %150 {offsets = [0, 0], sizes = [8, 128], strides = [1, 1]} : vector<8x512xf32> to vector<8x128xf32>
    %cst_59 = arith.constant 5.000000e-01 : f32
    %152 = vector.broadcast %cst_59 : f32 to vector<8x128xf32>
    %153 = arith.mulf %152, %151 : vector<8x128xf32>
    %154 = math.tanh %153 : vector<8x128xf32>
    %cst_60 = arith.constant 1.000000e+00 : f32
    %155 = vector.broadcast %cst_60 : f32 to vector<8x128xf32>
    %156 = arith.addf %154, %155 : vector<8x128xf32>
    %cst_61 = arith.constant 5.000000e-01 : f32
    %157 = vector.broadcast %cst_61 : f32 to vector<8x128xf32>
    %158 = arith.mulf %157, %156 : vector<8x128xf32>
    %159 = vector.extract_strided_slice %150 {offsets = [0, 128], sizes = [8, 128], strides = [1, 1]} : vector<8x512xf32> to vector<8x128xf32>
    %cst_62 = arith.constant 5.000000e-01 : f32
    %160 = vector.broadcast %cst_62 : f32 to vector<8x128xf32>
    %161 = arith.mulf %160, %159 : vector<8x128xf32>
    %162 = math.tanh %161 : vector<8x128xf32>
    %cst_63 = arith.constant 1.000000e+00 : f32
    %163 = vector.broadcast %cst_63 : f32 to vector<8x128xf32>
    %164 = arith.addf %162, %163 : vector<8x128xf32>
    %cst_64 = arith.constant 5.000000e-01 : f32
    %165 = vector.broadcast %cst_64 : f32 to vector<8x128xf32>
    %166 = arith.mulf %165, %164 : vector<8x128xf32>
    %167 = vector.extract_strided_slice %150 {offsets = [0, 256], sizes = [8, 128], strides = [1, 1]} : vector<8x512xf32> to vector<8x128xf32>
    %168 = math.tanh %167 : vector<8x128xf32>
    %169 = vector.extract_strided_slice %150 {offsets = [0, 384], sizes = [8, 128], strides = [1, 1]} : vector<8x512xf32> to vector<8x128xf32>
    %cst_65 = arith.constant 5.000000e-01 : f32
    %170 = vector.broadcast %cst_65 : f32 to vector<8x128xf32>
    %171 = arith.mulf %170, %169 : vector<8x128xf32>
    %172 = math.tanh %171 : vector<8x128xf32>
    %cst_66 = arith.constant 1.000000e+00 : f32
    %173 = vector.broadcast %cst_66 : f32 to vector<8x128xf32>
    %174 = arith.addf %172, %173 : vector<8x128xf32>
    %cst_67 = arith.constant 5.000000e-01 : f32
    %175 = vector.broadcast %cst_67 : f32 to vector<8x128xf32>
    %176 = arith.mulf %175, %174 : vector<8x128xf32>
    %177 = arith.mulf %166, %143 : vector<8x128xf32>
    %178 = arith.mulf %158, %168 : vector<8x128xf32>
    %179 = arith.addf %177, %178 : vector<8x128xf32>
    %180 = math.tanh %179 : vector<8x128xf32>
    %181 = arith.mulf %176, %180 : vector<8x128xf32>
    %c40 = arith.constant 40 : index
    %c0_68 = arith.constant 0 : index
    %182 = vector.load %arg0[%c40, %c0_68] : memref<64x512xf32, #tpu.memory_space<vmem>>, vector<8x512xf32>
    %183 = arith.truncf %181 : vector<8x128xf32> to vector<8x128xbf16>
    %c0_69 = arith.constant 0 : index
    %c0_70 = arith.constant 0 : index
    %184 = vector.load %arg3[%c0_69, %c0_70] : memref<128x512xbf16, #tpu.memory_space<vmem>>, vector<128x512xbf16>
    %cst_71 = arith.constant dense<0.000000e+00> : vector<8x512xf32>
    %185 = tpu.matmul %183, %184, %cst_71 {dimension_numbers = #tpu.dot_dimension_numbers<[1], [0], [0], [1], [0, 0, 1, 1], [], []>} : vector<8x128xbf16>, vector<128x512xbf16>, vector<8x512xf32> -> vector<8x512xf32>
    %186 = arith.addf %182, %185 : vector<8x512xf32>
    %187 = vector.extract_strided_slice %186 {offsets = [0, 0], sizes = [8, 128], strides = [1, 1]} : vector<8x512xf32> to vector<8x128xf32>
    %cst_72 = arith.constant 5.000000e-01 : f32
    %188 = vector.broadcast %cst_72 : f32 to vector<8x128xf32>
    %189 = arith.mulf %188, %187 : vector<8x128xf32>
    %190 = math.tanh %189 : vector<8x128xf32>
    %cst_73 = arith.constant 1.000000e+00 : f32
    %191 = vector.broadcast %cst_73 : f32 to vector<8x128xf32>
    %192 = arith.addf %190, %191 : vector<8x128xf32>
    %cst_74 = arith.constant 5.000000e-01 : f32
    %193 = vector.broadcast %cst_74 : f32 to vector<8x128xf32>
    %194 = arith.mulf %193, %192 : vector<8x128xf32>
    %195 = vector.extract_strided_slice %186 {offsets = [0, 128], sizes = [8, 128], strides = [1, 1]} : vector<8x512xf32> to vector<8x128xf32>
    %cst_75 = arith.constant 5.000000e-01 : f32
    %196 = vector.broadcast %cst_75 : f32 to vector<8x128xf32>
    %197 = arith.mulf %196, %195 : vector<8x128xf32>
    %198 = math.tanh %197 : vector<8x128xf32>
    %cst_76 = arith.constant 1.000000e+00 : f32
    %199 = vector.broadcast %cst_76 : f32 to vector<8x128xf32>
    %200 = arith.addf %198, %199 : vector<8x128xf32>
    %cst_77 = arith.constant 5.000000e-01 : f32
    %201 = vector.broadcast %cst_77 : f32 to vector<8x128xf32>
    %202 = arith.mulf %201, %200 : vector<8x128xf32>
    %203 = vector.extract_strided_slice %186 {offsets = [0, 256], sizes = [8, 128], strides = [1, 1]} : vector<8x512xf32> to vector<8x128xf32>
    %204 = math.tanh %203 : vector<8x128xf32>
    %205 = vector.extract_strided_slice %186 {offsets = [0, 384], sizes = [8, 128], strides = [1, 1]} : vector<8x512xf32> to vector<8x128xf32>
    %cst_78 = arith.constant 5.000000e-01 : f32
    %206 = vector.broadcast %cst_78 : f32 to vector<8x128xf32>
    %207 = arith.mulf %206, %205 : vector<8x128xf32>
    %208 = math.tanh %207 : vector<8x128xf32>
    %cst_79 = arith.constant 1.000000e+00 : f32
    %209 = vector.broadcast %cst_79 : f32 to vector<8x128xf32>
    %210 = arith.addf %208, %209 : vector<8x128xf32>
    %cst_80 = arith.constant 5.000000e-01 : f32
    %211 = vector.broadcast %cst_80 : f32 to vector<8x128xf32>
    %212 = arith.mulf %211, %210 : vector<8x128xf32>
    %213 = arith.mulf %202, %179 : vector<8x128xf32>
    %214 = arith.mulf %194, %204 : vector<8x128xf32>
    %215 = arith.addf %213, %214 : vector<8x128xf32>
    %216 = math.tanh %215 : vector<8x128xf32>
    %217 = arith.mulf %212, %216 : vector<8x128xf32>
    %c48 = arith.constant 48 : index
    %c0_81 = arith.constant 0 : index
    %218 = vector.load %arg0[%c48, %c0_81] : memref<64x512xf32, #tpu.memory_space<vmem>>, vector<8x512xf32>
    %219 = arith.truncf %217 : vector<8x128xf32> to vector<8x128xbf16>
    %c0_82 = arith.constant 0 : index
    %c0_83 = arith.constant 0 : index
    %220 = vector.load %arg3[%c0_82, %c0_83] : memref<128x512xbf16, #tpu.memory_space<vmem>>, vector<128x512xbf16>
    %cst_84 = arith.constant dense<0.000000e+00> : vector<8x512xf32>
    %221 = tpu.matmul %219, %220, %cst_84 {dimension_numbers = #tpu.dot_dimension_numbers<[1], [0], [0], [1], [0, 0, 1, 1], [], []>} : vector<8x128xbf16>, vector<128x512xbf16>, vector<8x512xf32> -> vector<8x512xf32>
    %222 = arith.addf %218, %221 : vector<8x512xf32>
    %223 = vector.extract_strided_slice %222 {offsets = [0, 0], sizes = [8, 128], strides = [1, 1]} : vector<8x512xf32> to vector<8x128xf32>
    %cst_85 = arith.constant 5.000000e-01 : f32
    %224 = vector.broadcast %cst_85 : f32 to vector<8x128xf32>
    %225 = arith.mulf %224, %223 : vector<8x128xf32>
    %226 = math.tanh %225 : vector<8x128xf32>
    %cst_86 = arith.constant 1.000000e+00 : f32
    %227 = vector.broadcast %cst_86 : f32 to vector<8x128xf32>
    %228 = arith.addf %226, %227 : vector<8x128xf32>
    %cst_87 = arith.constant 5.000000e-01 : f32
    %229 = vector.broadcast %cst_87 : f32 to vector<8x128xf32>
    %230 = arith.mulf %229, %228 : vector<8x128xf32>
    %231 = vector.extract_strided_slice %222 {offsets = [0, 128], sizes = [8, 128], strides = [1, 1]} : vector<8x512xf32> to vector<8x128xf32>
    %cst_88 = arith.constant 5.000000e-01 : f32
    %232 = vector.broadcast %cst_88 : f32 to vector<8x128xf32>
    %233 = arith.mulf %232, %231 : vector<8x128xf32>
    %234 = math.tanh %233 : vector<8x128xf32>
    %cst_89 = arith.constant 1.000000e+00 : f32
    %235 = vector.broadcast %cst_89 : f32 to vector<8x128xf32>
    %236 = arith.addf %234, %235 : vector<8x128xf32>
    %cst_90 = arith.constant 5.000000e-01 : f32
    %237 = vector.broadcast %cst_90 : f32 to vector<8x128xf32>
    %238 = arith.mulf %237, %236 : vector<8x128xf32>
    %239 = vector.extract_strided_slice %222 {offsets = [0, 256], sizes = [8, 128], strides = [1, 1]} : vector<8x512xf32> to vector<8x128xf32>
    %240 = math.tanh %239 : vector<8x128xf32>
    %241 = vector.extract_strided_slice %222 {offsets = [0, 384], sizes = [8, 128], strides = [1, 1]} : vector<8x512xf32> to vector<8x128xf32>
    %cst_91 = arith.constant 5.000000e-01 : f32
    %242 = vector.broadcast %cst_91 : f32 to vector<8x128xf32>
    %243 = arith.mulf %242, %241 : vector<8x128xf32>
    %244 = math.tanh %243 : vector<8x128xf32>
    %cst_92 = arith.constant 1.000000e+00 : f32
    %245 = vector.broadcast %cst_92 : f32 to vector<8x128xf32>
    %246 = arith.addf %244, %245 : vector<8x128xf32>
    %cst_93 = arith.constant 5.000000e-01 : f32
    %247 = vector.broadcast %cst_93 : f32 to vector<8x128xf32>
    %248 = arith.mulf %247, %246 : vector<8x128xf32>
    %249 = arith.mulf %238, %215 : vector<8x128xf32>
    %250 = arith.mulf %230, %240 : vector<8x128xf32>
    %251 = arith.addf %249, %250 : vector<8x128xf32>
    %252 = math.tanh %251 : vector<8x128xf32>
    %253 = arith.mulf %248, %252 : vector<8x128xf32>
    %c56 = arith.constant 56 : index
    %c0_94 = arith.constant 0 : index
    %254 = vector.load %arg0[%c56, %c0_94] : memref<64x512xf32, #tpu.memory_space<vmem>>, vector<8x512xf32>
    %255 = arith.truncf %253 : vector<8x128xf32> to vector<8x128xbf16>
    %c0_95 = arith.constant 0 : index
    %c0_96 = arith.constant 0 : index
    %256 = vector.load %arg3[%c0_95, %c0_96] : memref<128x512xbf16, #tpu.memory_space<vmem>>, vector<128x512xbf16>
    %cst_97 = arith.constant dense<0.000000e+00> : vector<8x512xf32>
    %257 = tpu.matmul %255, %256, %cst_97 {dimension_numbers = #tpu.dot_dimension_numbers<[1], [0], [0], [1], [0, 0, 1, 1], [], []>} : vector<8x128xbf16>, vector<128x512xbf16>, vector<8x512xf32> -> vector<8x512xf32>
    %258 = arith.addf %254, %257 : vector<8x512xf32>
    %259 = vector.extract_strided_slice %258 {offsets = [0, 0], sizes = [8, 128], strides = [1, 1]} : vector<8x512xf32> to vector<8x128xf32>
    %cst_98 = arith.constant 5.000000e-01 : f32
    %260 = vector.broadcast %cst_98 : f32 to vector<8x128xf32>
    %261 = arith.mulf %260, %259 : vector<8x128xf32>
    %262 = math.tanh %261 : vector<8x128xf32>
    %cst_99 = arith.constant 1.000000e+00 : f32
    %263 = vector.broadcast %cst_99 : f32 to vector<8x128xf32>
    %264 = arith.addf %262, %263 : vector<8x128xf32>
    %cst_100 = arith.constant 5.000000e-01 : f32
    %265 = vector.broadcast %cst_100 : f32 to vector<8x128xf32>
    %266 = arith.mulf %265, %264 : vector<8x128xf32>
    %267 = vector.extract_strided_slice %258 {offsets = [0, 128], sizes = [8, 128], strides = [1, 1]} : vector<8x512xf32> to vector<8x128xf32>
    %cst_101 = arith.constant 5.000000e-01 : f32
    %268 = vector.broadcast %cst_101 : f32 to vector<8x128xf32>
    %269 = arith.mulf %268, %267 : vector<8x128xf32>
    %270 = math.tanh %269 : vector<8x128xf32>
    %cst_102 = arith.constant 1.000000e+00 : f32
    %271 = vector.broadcast %cst_102 : f32 to vector<8x128xf32>
    %272 = arith.addf %270, %271 : vector<8x128xf32>
    %cst_103 = arith.constant 5.000000e-01 : f32
    %273 = vector.broadcast %cst_103 : f32 to vector<8x128xf32>
    %274 = arith.mulf %273, %272 : vector<8x128xf32>
    %275 = vector.extract_strided_slice %258 {offsets = [0, 256], sizes = [8, 128], strides = [1, 1]} : vector<8x512xf32> to vector<8x128xf32>
    %276 = math.tanh %275 : vector<8x128xf32>
    %277 = vector.extract_strided_slice %258 {offsets = [0, 384], sizes = [8, 128], strides = [1, 1]} : vector<8x512xf32> to vector<8x128xf32>
    %cst_104 = arith.constant 5.000000e-01 : f32
    %278 = vector.broadcast %cst_104 : f32 to vector<8x128xf32>
    %279 = arith.mulf %278, %277 : vector<8x128xf32>
    %280 = math.tanh %279 : vector<8x128xf32>
    %cst_105 = arith.constant 1.000000e+00 : f32
    %281 = vector.broadcast %cst_105 : f32 to vector<8x128xf32>
    %282 = arith.addf %280, %281 : vector<8x128xf32>
    %cst_106 = arith.constant 5.000000e-01 : f32
    %283 = vector.broadcast %cst_106 : f32 to vector<8x128xf32>
    %284 = arith.mulf %283, %282 : vector<8x128xf32>
    %285 = arith.mulf %274, %251 : vector<8x128xf32>
    %286 = arith.mulf %266, %276 : vector<8x128xf32>
    %287 = arith.addf %285, %286 : vector<8x128xf32>
    %288 = math.tanh %287 : vector<8x128xf32>
    %289 = arith.mulf %284, %288 : vector<8x128xf32>
    %290 = arith.truncf %289 : vector<8x128xf32> to vector<8x128xbf16>
    %c0_107 = arith.constant 0 : index
    %c0_108 = arith.constant 0 : index
    %291 = vector.load %arg4[%c0_107, %c0_108] : memref<128x128xbf16, #tpu.memory_space<vmem>>, vector<128x128xbf16>
    %cst_109 = arith.constant dense<0.000000e+00> : vector<8x128xf32>
    %292 = tpu.matmul %290, %291, %cst_109 {dimension_numbers = #tpu.dot_dimension_numbers<[1], [0], [0], [1], [0, 0, 1, 1], [], []>} : vector<8x128xbf16>, vector<128x128xbf16>, vector<8x128xf32> -> vector<8x128xf32>
    %c0_110 = arith.constant 0 : index
    %c0_111 = arith.constant 0 : index
    %293 = vector.load %arg5[%c0_110, %c0_111] : memref<1x128xf32, #tpu.memory_space<vmem>>, vector<1x128xf32>
    %294 = vector.broadcast %293 : vector<1x128xf32> to vector<8x128xf32>
    %295 = arith.addf %292, %294 : vector<8x128xf32>
    %c0_112 = arith.constant 0 : index
    %c0_113 = arith.constant 0 : index
    %296 = vector.load %arg6[%c0_112, %c0_113] : memref<8x128xf32, #tpu.memory_space<vmem>>, vector<8x128xf32>
    tpu.vector_store %arg6[%c0_112, %c0_113], %295 {strides = array<i32>} : memref<8x128xf32, #tpu.memory_space<vmem>>, vector<8x128xf32>,
    return
  }
}

</mosaic_0001>

<bundles_post_ra>
// kernel: tpu_custom_call.1
= control target key start
LH: loop header
LB: loop body
LE: loop exit
PB: predicated region body
PF: predicated region fallthrough
CT: control target
= control target key end

     0   :  { %11 = vsyncpa [#allocation3], 0  ;;  %s2142_s0 = inlined_call_operand.hbm [shape: f32[64,512], index: 0, kind: input, shape index: {}]   ;;  %s2143_s1 = inlined_call_operand.hbm [shape: f32[8,128], index: 1, kind: input, shape index: {}]   ;;  %s2144_s2 = inlined_call_operand.hbm [shape: f32[8,128], index: 2, kind: input, shape index: {}]   ;;  %s2145_s3 = inlined_call_operand.hbm [shape: bf16[128,512], index: 3, kind: input, shape index: {}]   ;;  %s2146_s4 = inlined_call_operand.hbm [shape: bf16[128,128], index: 4, kind: input, shape index: {}]   ;;  %s2147_s5 = inlined_call_operand.vmem [shape: f32[1,128], index: 5, kind: input, shape index: {}]   ;;  %s2148_s6 = inlined_call_operand.hbm [shape: f32[8,128], index: 6, kind: output, shape index: {}]  }
   0x1   :  { %12 = vsyncpa [#allocation6], 0 }
   0x2   :  { %13 = vsyncpa [#allocation9], 0 }
   0x3   :  { %14 = vsyncpa [#allocation4], 0  ;;  %s1675_s21 = smov [#allocation5]   ;;  %s1676_s23 = smov [#allocation8]  }
   0x4   :  { %s33_s22 = sshll.u32 %s1675_s21, 4  ;;  %s52_s24 = sshll.u32 %s1676_s23, 4  ;;  %s34_s22 = int_to_ptr.vmem [resolvable:$true] %s33_s22  ;;  %s1725_s24 = int_to_ptr.vmem [resolvable:$true] %s52_s24 }
   0x5   :  { %s1535_s27 = scalar_lea.hbm %s2143_s1, 128 }
   0x6   :  { %p1536_p0 = scmp.ne.s32.totalorder %s2143_s1, %s1535_s27  ;;  %p1539_p1 = scmp.lt.u32.totalorder %s1535_s27, %s2143_s1 }
   0x8   :  { %p1541_p2 = pnand %p1539_p1, %p1536_p0 }
   0xa   :  { %1544 = shalt.err (!%p1541_p2)
}
   0xb   :  { %s1545_s8 = scalar_lea.vmem %s34_s22, 128  ;;  %p1550_p4 = scmp.lt.s32.totalorder %s34_s22, %s34_s22 }
   0xc   :  { %p1546_p3 = scmp.ne.s32.totalorder %s34_s22, %s1545_s8  ;;  %p1551_p5 = scmp.lt.s32.totalorder %s1545_s8, %s1545_s8 }
   0xe   :  { %p1552_p6 = por %p1551_p5, %p1550_p4 }
  0x10   :  { %p1553_p7 = pnand %p1552_p6, %p1546_p3 }
  0x12   :  { %1556 = shalt.err (!%p1553_p7)
}
  0x13   :  { %36 = dma.hbm_to_vmem [thread:$0]  %s2143_s1, 128, %s34_s22, [#allocation6]  }
  0x14   :  { %s1557_s13 = scalar_lea.hbm %s2145_s3, 4096 }
  0x15   :  { %p1558_p8 = scmp.ne.s32.totalorder %s2145_s3, %s1557_s13  ;;  %p1561_p9 = scmp.lt.u32.totalorder %s1557_s13, %s2145_s3 }
  0x17   :  { %p1563_p10 = pnand %p1561_p9, %p1558_p8 }
  0x19   :  { %1566 = shalt.err (!%p1563_p10)
}
  0x1a   :  { %s1567_s18 = scalar_lea.vmem %s1725_s24, 4096  ;;  %p1572_p12 = scmp.lt.s32.totalorder %s1725_s24, %s1725_s24 }
  0x1b   :  { %p1568_p11 = scmp.ne.s32.totalorder %s1725_s24, %s1567_s18  ;;  %p1573_p13 = scmp.lt.s32.totalorder %s1567_s18, %s1567_s18 }
  0x1d   :  { %p1574_p0 = por %p1573_p13, %p1572_p12 }
  0x1f   :  { %p1575_p1 = pnand %p1574_p0, %p1568_p11 }
  0x21   :  { %1578 = shalt.err (!%p1575_p1)
}
  0x22   :  { %s1677_s1 = smov 256   ;;  %s1678_s19 = smov 16  }
  0x23   :  { %58 = dma.hbm_to_vmem [thread:$0]  %s2145_s3, 4096, %s1725_s24, [#allocation9], %s1677_s1, %s1677_s1, %s1678_s19  }
  0x24   :  { %s1679_s22 = smov [#allocation2]   ;;  %s1579_s27 = scalar_lea.hbm %s2142_s0, 4096 }
  0x25   :  { %s20_s23 = sshll.u32 %s1679_s22, 4  ;;  %p1580_p2 = scmp.ne.s32.totalorder %s2142_s0, %s1579_s27  ;;  %s21_s23 = int_to_ptr.vmem [resolvable:$true] %s20_s23 }
  0x26   :  { %p1583_p3 = scmp.lt.u32.totalorder %s1579_s27, %s2142_s0 }
  0x28   :  { %p1585_p4 = pnand %p1583_p3, %p1580_p2 }
  0x2a   :  { %1588 = shalt.err (!%p1585_p4)
}
  0x2b   :  { %s1589_s8 = scalar_lea.vmem %s21_s23, 4096  ;;  %p1594_p6 = scmp.lt.s32.totalorder %s21_s23, %s21_s23 }
  0x2c   :  { %p1590_p5 = scmp.ne.s32.totalorder %s21_s23, %s1589_s8  ;;  %p1595_p7 = scmp.lt.s32.totalorder %s1589_s8, %s1589_s8 }
  0x2e   :  { %p1596_p8 = por %p1595_p7, %p1594_p6 }
  0x30   :  { %p1597_p9 = pnand %p1596_p8, %p1590_p5 }
  0x32   :  { %1600 = shalt.err (!%p1597_p9)
}
  0x33   :  { %s1680_s3 = smov 512   ;;  %s1681_s24 = smov 32  }
  0x34   :  { %26 = dma.hbm_to_vmem [thread:$0]  %s2142_s0, 4096, %s21_s23, [#allocation3], %s1680_s3, %s1680_s3, %s1681_s24  }
  0x35   :  { %s1682_s11 = smov [#allocation7]   ;;  %s1683_s13 = smov [#allocation10]  }
  0x36   :  { %s43_s12 = sshll.u32 %s1682_s11, 4  ;;  %s64_s14 = sshll.u32 %s1683_s13, 4  ;;  %s44_s12 = int_to_ptr.vmem [resolvable:$true] %s43_s12  ;;  %s65_s14 = int_to_ptr.vmem [resolvable:$true] %s64_s14 }
  0x37   :  { %s1601_s17 = scalar_lea.hbm %s2144_s2, 128 }
  0x38   :  { %p1602_p10 = scmp.ne.s32.totalorder %s2144_s2, %s1601_s17  ;;  %p1605_p11 = scmp.lt.u32.totalorder %s1601_s17, %s2144_s2 }
  0x3a   :  { %p1607_p12 = pnand %p1605_p11, %p1602_p10 }
  0x3c   :  { %1610 = shalt.err (!%p1607_p12)
}
  0x3d   :  { %s1611_s0 = scalar_lea.vmem %s44_s12, 128  ;;  %p1616_p0 = scmp.lt.s32.totalorder %s44_s12, %s44_s12 }
  0x3e   :  { %p1612_p13 = scmp.ne.s32.totalorder %s44_s12, %s1611_s0  ;;  %p1617_p1 = scmp.lt.s32.totalorder %s1611_s0, %s1611_s0 }
  0x40   :  { %p1618_p2 = por %p1617_p1, %p1616_p0 }
  0x42   :  { %p1619_p3 = pnand %p1618_p2, %p1612_p13 }
  0x44   :  { %1622 = shalt.err (!%p1619_p3)
}
  0x45   :  { %46 = dma.hbm_to_vmem [thread:$0]  %s2144_s2, 128, %s44_s12, [#allocation6]  }
  0x46   :  { %s1623_s26 = scalar_lea.hbm %s2146_s4, 1024 }
  0x47   :  { %p1624_p4 = scmp.ne.s32.totalorder %s2146_s4, %s1623_s26  ;;  %p1627_p5 = scmp.lt.u32.totalorder %s1623_s26, %s2146_s4 }
  0x49   :  { %p1629_p6 = pnand %p1627_p5, %p1624_p4 }
  0x4b   :  { %1632 = shalt.err (!%p1629_p6)
}
  0x4c   :  { %s1633_s7 = scalar_lea.vmem %s65_s14, 1024  ;;  %p1638_p8 = scmp.lt.s32.totalorder %s65_s14, %s65_s14 }
  0x4d   :  { %p1634_p7 = scmp.ne.s32.totalorder %s65_s14, %s1633_s7  ;;  %p1639_p9 = scmp.lt.s32.totalorder %s1633_s7, %s1633_s7 }
  0x4f   :  { %p1640_p10 = por %p1639_p9, %p1638_p8 }
  0x51   :  { %p1641_p11 = pnand %p1640_p10, %p1634_p7 }
  0x53   :  { %1644 = shalt.err (!%p1641_p11)
}
  0x54   :  { %s1684_s2 = smov 64   ;;  %s1685_s8 = smov 4  }
  0x55   :  { %70 = dma.hbm_to_vmem [thread:$0]  %s2146_s4, 1024, %s65_s14, [#allocation9], %s1684_s2, %s1684_s2, %s1685_s8  }
  0x56   :  { %1667 = dma.done.wait [#allocation3], 4096  }
  0x57   :  { %1668 = vsyncadd [#allocation3], 4294963200 }
  0x58   :  { %1669 = dma.done.wait [#allocation6], 256  }
  0x59   :  { %1670 = vsyncadd [#allocation6], 4294967040 }
  0x5a   :  { %1671 = dma.done.wait [#allocation9], 5120  }
  0x5b   :  { %1672 = vsyncadd [#allocation9], 4294962176  ;;  %v1686_v0 = vmov 0   ;;  %v1794_v1 = vld [vmem:[#allocation8 + $0x4] ss:$16 sps:$4 sm:$0xff]   ;;  %v92_v36 = vld [vmem:[#allocation2 + $0x8] sm:$0xff] }
  0x5c   :  { %320 = vmatprep.mubr.bf16.mxu0 %v1686_v0  ;;  %361 = vmatprep.mubr.bf16.mxu1 %v1686_v0  ;;  %v1796_v2 = vld [vmem:[#allocation8] ss:$16 sps:$4 sm:$0xff]   ;;  %v1799_v3 = vld [vmem:[#allocation8 + $0x24] ss:$16 sps:$4 sm:$0xff]   ;;  %v1802_v4 = vld [vmem:[#allocation8 + $0xc] ss:$16 sps:$4 sm:$0xff]  }
  0x5d   :  { %288 = vmatprep.subr.bf16.mxu0 %v1794_v1  ;;  %v1804_v5 = vld [vmem:[#allocation8 + $0x20] ss:$16 sps:$4 sm:$0xff]   ;;  %v1806_v6 = vld [vmem:[#allocation8 + $0x8] ss:$16 sps:$4 sm:$0xff]   ;;  %v1809_v7 = vld [vmem:[#allocation8 + $0x44] ss:$16 sps:$4 sm:$0xff]   ;;  %329 = vmatprep.subr.bf16.mxu1 %v1802_v4 }
  0x5e   :  { %289 = vmatpush1.bf16.msra.mxu0 %v1796_v2  ;;  %v1812_v8 = vld [vmem:[#allocation8 + $0x2c] ss:$16 sps:$4 sm:$0xff]   ;;  %330 = vmatpush1.bf16.msra.mxu1 %v1806_v6  ;;  %v1815_v9 = vld [vmem:[#allocation8 + $0x28] ss:$16 sps:$4 sm:$0xff]   ;;  %v1819_v10 = vld [vmem:[#allocation8 + $0x40] ss:$16 sps:$4 sm:$0xff]  }
  0x5f   :  { %290 = vmatprep.subr.bf16.mxu0 %v1799_v3  ;;  %331 = vmatprep.subr.bf16.mxu1 %v1812_v8  ;;  %v1822_v11 = vld [vmem:[#allocation8 + $0x64] ss:$16 sps:$4 sm:$0xff]   ;;  %v1824_v12 = vld [vmem:[#allocation8 + $0x4c] ss:$16 sps:$4 sm:$0xff]   ;;  %v1827_v13 = vld [vmem:[#allocation8 + $0x48] ss:$16 sps:$4 sm:$0xff]  }
  0x60   :  { %v1831_v14 = vld [vmem:[#allocation8 + $0x60] ss:$16 sps:$4 sm:$0xff]   ;;  %v1833_v15 = vld [vmem:[#allocation8 + $0x6c] ss:$16 sps:$4 sm:$0xff]   ;;  %v1836_v16 = vld [vmem:[#allocation8 + $0x84] ss:$16 sps:$4 sm:$0xff]  }
  0x61   :  { %v1839_v17 = vld [vmem:[#allocation8 + $0x80] ss:$16 sps:$4 sm:$0xff]   ;;  %v1841_v18 = vld [vmem:[#allocation8 + $0x68] ss:$16 sps:$4 sm:$0xff]   ;;  %v1845_v19 = vld [vmem:[#allocation8 + $0x8c] ss:$16 sps:$4 sm:$0xff]  }
  0x62   :  { %291 = vmatpush1.bf16.msra.mxu0 %v1804_v5  ;;  %332 = vmatpush1.bf16.msra.mxu1 %v1815_v9  ;;  %v1848_v20 = vld [vmem:[#allocation8 + $0xa4] ss:$16 sps:$4 sm:$0xff]   ;;  %v1851_v21 = vld [vmem:[#allocation8 + $0x88] ss:$16 sps:$4 sm:$0xff]   ;;  %v1855_v22 = vld [vmem:[#allocation8 + $0xa0] ss:$16 sps:$4 sm:$0xff]  }
  0x63   :  { %292 = vmatprep.subr.bf16.mxu0 %v1809_v7  ;;  %333 = vmatprep.subr.bf16.mxu1 %v1824_v12  ;;  %v1857_v23 = vld [vmem:[#allocation8 + $0xac] ss:$16 sps:$4 sm:$0xff]   ;;  %v1860_v24 = vld [vmem:[#allocation8 + $0xc4] ss:$16 sps:$4 sm:$0xff]   ;;  %v1862_v25 = vld [vmem:[#allocation8 + $0xc0] ss:$16 sps:$4 sm:$0xff]  }
  0x64   :  { %v1864_v26 = vld [vmem:[#allocation8 + $0xa8] ss:$16 sps:$4 sm:$0xff]   ;;  %v1866_v27 = vld [vmem:[#allocation8 + $0xcc] ss:$16 sps:$4 sm:$0xff]   ;;  %v1869_v28 = vld [vmem:[#allocation8 + $0xe4] ss:$16 sps:$4 sm:$0xff]  }
  0x65   :  { %v1874_v29 = vld [vmem:[#allocation8 + $0xc8] ss:$16 sps:$4 sm:$0xff]   ;;  %v1876_v30 = vld [vmem:[#allocation8 + $0xe0] ss:$16 sps:$4 sm:$0xff]   ;;  %v1881_v32 = vld [vmem:[#allocation8 + $0xec] ss:$16 sps:$4 sm:$0xff]  }
  0x66   :  { %293 = vmatpush1.bf16.msra.mxu0 %v1819_v10  ;;  %334 = vmatpush1.bf16.msra.mxu1 %v1827_v13  ;;  %v89_v31 = vld [vmem:[#allocation5] sm:$0xff]  ;;  %v1885_v34 = vld [vmem:[#allocation8 + $0xe8] ss:$16 sps:$4 sm:$0xff]   ;;  %v93_v40 = vld [vmem:[#allocation2 + $0x10] sm:$0xff]  ;;  %vm1688_vm0 = vmmov 0   ;;  %s1689_s10 = smov [#allocation11]  }
  0x67   :  { %294 = vmatprep.subr.bf16.mxu0 %v1822_v11  ;;  %335 = vmatprep.subr.bf16.mxu1 %v1833_v15  ;;  %v95_v33 = vpack.c.bf16 %v89_v31, %v89_v31  ;;  %v91_v35 = vld [vmem:[#allocation2] sm:$0xff]  ;;  %v94_v50 = vld [vmem:[#allocation2 + $0x18] sm:$0xff]  ;;  %v90_v60 = vld [vmem:[#allocation7] sm:$0xff]  ;;  %s1274_s11 = sshll.u32 %s1689_s10, 4  ;;  %s1275_s11 = int_to_ptr.vmem [resolvable:$true] %s1274_s11 }
  0x68   :  { %s1645_s12 = scalar_lea.vmem %s1275_s11, 128  ;;  %p1650_p13 = scmp.lt.s32.totalorder %s1275_s11, %s1275_s11 }
  0x69   :  { %p1646_p12 = scmp.ne.s32.totalorder %s1275_s11, %s1645_s12  ;;  %p1651_p0 = scmp.lt.s32.totalorder %s1645_s12, %s1645_s12 }
  0x6a   :  { %295 = vmatpush1.bf16.msra.mxu0 %v1831_v14  ;;  %336 = vmatpush1.bf16.msra.mxu1 %v1841_v18 }
  0x6b   :  { %296 = vmatprep.subr.bf16.mxu0 %v1836_v16  ;;  %337 = vmatprep.subr.bf16.mxu1 %v1845_v19  ;;  %p1652_p1 = por %p1651_p0, %p1650_p13 }
  0x6d   :  { %p1653_p2 = pnand %p1652_p1, %p1646_p12 }
  0x6e   :  { %297 = vmatpush1.bf16.msra.mxu0 %v1839_v17  ;;  %338 = vmatpush1.bf16.msra.mxu1 %v1851_v21 }
  0x6f   :  { %298 = vmatprep.subr.bf16.mxu0 %v1848_v20  ;;  %339 = vmatprep.subr.bf16.mxu1 %v1857_v23 }
  0x72   :  { %299 = vmatpush1.bf16.msra.mxu0 %v1855_v22  ;;  %340 = vmatpush1.bf16.msra.mxu1 %v1864_v26 }
  0x73   :  { %300 = vmatprep.subr.bf16.mxu0 %v1860_v24  ;;  %341 = vmatprep.subr.bf16.mxu1 %v1866_v27 }
  0x76   :  { %301 = vmatpush1.bf16.msra.mxu0 %v1862_v25  ;;  %342 = vmatpush1.bf16.msra.mxu1 %v1874_v29 }
  0x77   :  { %302 = vmatprep.subr.bf16.mxu0 %v1869_v28  ;;  %343 = vmatprep.subr.bf16.mxu1 %v1881_v32 }
  0x7a   :  { %303 = vmatpush1.bf16.msra.mxu0 %v1876_v30  ;;  %344 = vmatpush1.bf16.msra.mxu1 %v1885_v34 }
  0x7b   :  { %397 = vmatprep.subr.bf16.mxu0 %v1794_v1  ;;  %438 = vmatprep.subr.bf16.mxu1 %v1802_v4 }
  0x7d   :  { %321 = vmatmul.mubr.bf16.vlgmr.msra.gmra.mrb[0].mxu0 %v95_v33  ;;  %362 = vmatmul.mubr.bf16.vlgmr.msra.gmra.mrb[0].mxu1 %v95_v33 }
  0x7e   :  { %398 = vmatpush1.bf16.msra.mxu0 %v1796_v2  ;;  %429 = vmatprep.mubr.bf16.mxu0 %v1686_v0 }
  0x7f   :  { %399 = vmatprep.subr.bf16.mxu0 %v1799_v3  ;;  %439 = vmatpush1.bf16.msra.mxu1 %v1806_v6 }
  0x80   :  { %470 = vmatprep.mubr.bf16.mxu1 %v1686_v0  ;;  %440 = vmatprep.subr.bf16.mxu1 %v1812_v8 }
  0x82   :  { %400 = vmatpush1.bf16.msra.mxu0 %v1804_v5 }
  0x83   :  { %401 = vmatprep.subr.bf16.mxu0 %v1809_v7  ;;  %441 = vmatpush1.bf16.msra.mxu1 %v1815_v9 }
  0x84   :  { %442 = vmatprep.subr.bf16.mxu1 %v1824_v12 }
  0x86   :  { %402 = vmatpush1.bf16.msra.mxu0 %v1819_v10 }
  0x87   :  { %403 = vmatprep.subr.bf16.mxu0 %v1822_v11  ;;  %443 = vmatpush1.bf16.msra.mxu1 %v1827_v13 }
  0x88   :  { %444 = vmatprep.subr.bf16.mxu1 %v1833_v15 }
  0x8a   :  { %404 = vmatpush1.bf16.msra.mxu0 %v1831_v14 }
  0x8b   :  { %405 = vmatprep.subr.bf16.mxu0 %v1836_v16  ;;  %445 = vmatpush1.bf16.msra.mxu1 %v1841_v18 }
  0x8c   :  { %446 = vmatprep.subr.bf16.mxu1 %v1845_v19 }
  0x8e   :  { %406 = vmatpush1.bf16.msra.mxu0 %v1839_v17 }
  0x8f   :  { %407 = vmatprep.subr.bf16.mxu0 %v1848_v20  ;;  %447 = vmatpush1.bf16.msra.mxu1 %v1851_v21 }
  0x90   :  { %448 = vmatprep.subr.bf16.mxu1 %v1857_v23 }
  0x92   :  { %408 = vmatpush1.bf16.msra.mxu0 %v1855_v22 }
  0x93   :  { %409 = vmatprep.subr.bf16.mxu0 %v1860_v24  ;;  %449 = vmatpush1.bf16.msra.mxu1 %v1864_v26 }
  0x94   :  { %450 = vmatprep.subr.bf16.mxu1 %v1866_v27 }
  0x96   :  { %410 = vmatpush1.bf16.msra.mxu0 %v1862_v25 }
  0x97   :  { %411 = vmatprep.subr.bf16.mxu0 %v1869_v28  ;;  %451 = vmatpush1.bf16.msra.mxu1 %v1874_v29 }
  0x98   :  { %452 = vmatprep.subr.bf16.mxu1 %v1881_v32 }
  0x9a   :  { %412 = vmatpush1.bf16.msra.mxu0 %v1876_v30 }
  0x9b   :  { %506 = vmatprep.subr.bf16.mxu0 %v1794_v1  ;;  %453 = vmatpush1.bf16.msra.mxu1 %v1885_v34 }
  0x9c   :  { %547 = vmatprep.subr.bf16.mxu1 %v1802_v4 }
 0x150   :  { %v322_v37 = vpop.f32.mrb[0].mxu0  ;;  %v363_v45 = vpop.f32.mrb[0].mxu1 }
 0x151   :  { %v370_v38 = vadd.f32 %v322_v37, %v91_v35  ;;  %v324_v39 = vpop.f32.mrb[1].mxu0  ;;  %v372_v47 = vadd.f32 %v363_v45, %v93_v40  ;;  %v365_v48 = vpop.f32.mrb[1].mxu1  ;;  %v392_v40 = vld [vmem:[#allocation2 + $0x20] sm:$0xff] }
 0x152   :  { %v371_v41 = vadd.f32 %v324_v39, %v92_v36  ;;  %v326_v42 = vpop.f32.mrb[2].mxu0  ;;  %v367_v49 = vpop.f32.mrb[2].mxu1  ;;  %v373_v52 = vadd.f32 %v365_v48, %v94_v50 }
 0x153   :  { %v374_v43 = vmul.f32 0.5, %v370_v38  ;;  %v327_v44 = vpop.f32.mrb[3].mxu0  ;;  %v368_v51 = vpop.f32.mrb[3].mxu1 }
 0x154   :  { %v378_v46 = vmul.f32 0.5, %v371_v41  ;;  %v383_v53 = vmul.f32 0.5, %v373_v52  ;;  %v393_v41 = vld [vmem:[#allocation2 + $0x28] sm:$0xff] }
 0x155   :  { %1426 = vtanh.f32 %v374_v43 }
 0x156   :  { %1428 = vtanh.f32 %v378_v46 }
 0x157   :  { %1430 = vtanh.f32 %v372_v47  ;;  %v394_v47 = vld [vmem:[#allocation2 + $0x30] sm:$0xff] }
 0x158   :  { %1432 = vtanh.f32 %v383_v53 }
 0x15f   :  { %v1427_v54 = vpop.eup %1426 }
 0x160   :  { %v1429_v55 = vpop.eup %1428  ;;  %v376_v56 = vadd.f32 1.0, %v1427_v54 }
 0x161   :  { %v1431_v57 = vpop.eup %1430  ;;  %v380_v58 = vadd.f32 1.0, %v1429_v55 }
 0x162   :  { %v377_v59 = vmul.f32 0.5, %v376_v56  ;;  %v1433_v33 = vpop.eup %1432  ;;  %v395_v56 = vld [vmem:[#allocation2 + $0x38] sm:$0xff] }
 0x163   :  { %v381_v61 = vmul.f32 0.5, %v380_v58  ;;  %v385_v35 = vadd.f32 1.0, %v1433_v33 }
 0x164   :  { %v388_v62 = vmul.f32 %v1431_v57, %v377_v59 }
 0x165   :  { %v387_v63 = vmul.f32 %v381_v61, %v90_v60  ;;  %v386_v36 = vmul.f32 0.5, %v385_v35 }
 0x167   :  { %v1926_v31 = vadd.f32 %v388_v62, %v387_v63 }
 0x169   :  { %1434 = vtanh.f32 %v1926_v31 }
 0x173   :  { %v1435_v37 = vpop.eup %1434 }
 0x174   :  { %v391_v38 = vmul.f32 %v1435_v37, %v386_v36 }
 0x176   :  { %v396_v39 = vpack.c.bf16 %v391_v38, %v391_v38 }
 0x178   :  { %430 = vmatmul.mubr.bf16.vlgmr.msra.gmra.mrb[4].mxu0 %v396_v39  ;;  %471 = vmatmul.mubr.bf16.vlgmr.msra.gmra.mrb[4].mxu1 %v396_v39 }
 0x179   :  { %507 = vmatpush1.bf16.msra.mxu0 %v1796_v2  ;;  %548 = vmatpush1.bf16.msra.mxu1 %v1806_v6 }
 0x17a   :  { %508 = vmatprep.subr.bf16.mxu0 %v1799_v3  ;;  %549 = vmatprep.subr.bf16.mxu1 %v1812_v8 }
 0x17b   :  { %538 = vmatprep.mubr.bf16.mxu0 %v1686_v0  ;;  %579 = vmatprep.mubr.bf16.mxu1 %v1686_v0 }
 0x17d   :  { %509 = vmatpush1.bf16.msra.mxu0 %v1804_v5  ;;  %550 = vmatpush1.bf16.msra.mxu1 %v1815_v9 }
 0x17e   :  { %510 = vmatprep.subr.bf16.mxu0 %v1809_v7  ;;  %551 = vmatprep.subr.bf16.mxu1 %v1824_v12 }
 0x181   :  { %511 = vmatpush1.bf16.msra.mxu0 %v1819_v10  ;;  %552 = vmatpush1.bf16.msra.mxu1 %v1827_v13 }
 0x182   :  { %512 = vmatprep.subr.bf16.mxu0 %v1822_v11  ;;  %553 = vmatprep.subr.bf16.mxu1 %v1833_v15 }
 0x185   :  { %513 = vmatpush1.bf16.msra.mxu0 %v1831_v14  ;;  %554 = vmatpush1.bf16.msra.mxu1 %v1841_v18 }
 0x186   :  { %514 = vmatprep.subr.bf16.mxu0 %v1836_v16  ;;  %555 = vmatprep.subr.bf16.mxu1 %v1845_v19 }
 0x189   :  { %515 = vmatpush1.bf16.msra.mxu0 %v1839_v17  ;;  %556 = vmatpush1.bf16.msra.mxu1 %v1851_v21 }
 0x18a   :  { %516 = vmatprep.subr.bf16.mxu0 %v1848_v20  ;;  %557 = vmatprep.subr.bf16.mxu1 %v1857_v23 }
 0x18d   :  { %517 = vmatpush1.bf16.msra.mxu0 %v1855_v22  ;;  %558 = vmatpush1.bf16.msra.mxu1 %v1864_v26 }
 0x18e   :  { %518 = vmatprep.subr.bf16.mxu0 %v1860_v24  ;;  %559 = vmatprep.subr.bf16.mxu1 %v1866_v27 }
 0x191   :  { %519 = vmatpush1.bf16.msra.mxu0 %v1862_v25  ;;  %560 = vmatpush1.bf16.msra.mxu1 %v1874_v29 }
 0x192   :  { %520 = vmatprep.subr.bf16.mxu0 %v1869_v28  ;;  %561 = vmatprep.subr.bf16.mxu1 %v1881_v32 }
 0x195   :  { %521 = vmatpush1.bf16.msra.mxu0 %v1876_v30  ;;  %562 = vmatpush1.bf16.msra.mxu1 %v1885_v34 }
 0x196   :  { %615 = vmatprep.subr.bf16.mxu0 %v1794_v1  ;;  %656 = vmatprep.subr.bf16.mxu1 %v1802_v4 }
 0x24b   :  { %v431_v42 = vpop.f32.mrb[4].mxu0  ;;  %v472_v43 = vpop.f32.mrb[4].mxu1 }
 0x24c   :  { %v479_v44 = vadd.f32 %v431_v42, %v392_v40  ;;  %v433_v45 = vpop.f32.mrb[5].mxu0  ;;  %v474_v46 = vpop.f32.mrb[5].mxu1  ;;  %v481_v55 = vadd.f32 %v472_v43, %v394_v47 }
 0x24d   :  { %v480_v48 = vadd.f32 %v433_v45, %v393_v41  ;;  %v435_v49 = vpop.f32.mrb[6].mxu0  ;;  %v476_v50 = vpop.f32.mrb[6].mxu1  ;;  %v482_v57 = vadd.f32 %v474_v46, %v395_v56  ;;  %v502_v45 = vld [vmem:[#allocation2 + $0x48] sm:$0xff] }
 0x24e   :  { %v483_v51 = vmul.f32 0.5, %v479_v44  ;;  %v436_v52 = vpop.f32.mrb[7].mxu0  ;;  %v477_v53 = vpop.f32.mrb[7].mxu1 }
 0x24f   :  { %v487_v54 = vmul.f32 0.5, %v480_v48  ;;  %v492_v58 = vmul.f32 0.5, %v482_v57 }
 0x250   :  { %1436 = vtanh.f32 %v483_v51  ;;  %v503_v51 = vld [vmem:[#allocation2 + $0x50] sm:$0xff] }
 0x251   :  { %1438 = vtanh.f32 %v487_v54 }
 0x252   :  { %1440 = vtanh.f32 %v481_v55 }
 0x253   :  { %1442 = vtanh.f32 %v492_v58 }
 0x25a   :  { %v1437_v59 = vpop.eup %1436 }
 0x25b   :  { %v1439_v60 = vpop.eup %1438  ;;  %v485_v61 = vadd.f32 1.0, %v1437_v59 }
 0x25c   :  { %v489_v62 = vadd.f32 1.0, %v1439_v60  ;;  %v1441_v33 = vpop.eup %1440  ;;  %v504_v60 = vld [vmem:[#allocation2 + $0x58] sm:$0xff] }
 0x25d   :  { %v486_v63 = vmul.f32 0.5, %v485_v61  ;;  %v1443_v39 = vpop.eup %1442 }
 0x25e   :  { %v490_v35 = vmul.f32 0.5, %v489_v62  ;;  %v494_v40 = vadd.f32 1.0, %v1443_v39 }
 0x25f   :  { %v497_v36 = vmul.f32 %v1441_v33, %v486_v63 }
 0x260   :  { %v496_v37 = vmul.f32 %v490_v35, %v1926_v31  ;;  %v495_v41 = vmul.f32 0.5, %v494_v40  ;;  %v501_v31 = vld [vmem:[#allocation2 + $0x40] sm:$0xff] }
 0x262   :  { %v1964_v38 = vadd.f32 %v497_v36, %v496_v37 }
 0x264   :  { %1444 = vtanh.f32 %v1964_v38 }
 0x26e   :  { %v1445_v42 = vpop.eup %1444 }
 0x26f   :  { %v500_v43 = vmul.f32 %v1445_v42, %v495_v41 }
 0x271   :  { %v505_v44 = vpack.c.bf16 %v500_v43, %v500_v43 }
 0x273   :  { %539 = vmatmul.mubr.bf16.vlgmr.msra.gmra.mrb[8].mxu0 %v505_v44  ;;  %580 = vmatmul.mubr.bf16.vlgmr.msra.gmra.mrb[8].mxu1 %v505_v44 }
 0x274   :  { %616 = vmatpush1.bf16.msra.mxu0 %v1796_v2  ;;  %657 = vmatpush1.bf16.msra.mxu1 %v1806_v6 }
 0x275   :  { %617 = vmatprep.subr.bf16.mxu0 %v1799_v3  ;;  %658 = vmatprep.subr.bf16.mxu1 %v1812_v8 }
 0x276   :  { %647 = vmatprep.mubr.bf16.mxu0 %v1686_v0  ;;  %688 = vmatprep.mubr.bf16.mxu1 %v1686_v0 }
 0x278   :  { %618 = vmatpush1.bf16.msra.mxu0 %v1804_v5  ;;  %659 = vmatpush1.bf16.msra.mxu1 %v1815_v9 }
 0x279   :  { %619 = vmatprep.subr.bf16.mxu0 %v1809_v7  ;;  %660 = vmatprep.subr.bf16.mxu1 %v1824_v12 }
 0x27c   :  { %620 = vmatpush1.bf16.msra.mxu0 %v1819_v10  ;;  %661 = vmatpush1.bf16.msra.mxu1 %v1827_v13 }
 0x27d   :  { %621 = vmatprep.subr.bf16.mxu0 %v1822_v11  ;;  %662 = vmatprep.subr.bf16.mxu1 %v1833_v15 }
 0x280   :  { %622 = vmatpush1.bf16.msra.mxu0 %v1831_v14  ;;  %663 = vmatpush1.bf16.msra.mxu1 %v1841_v18 }
 0x281   :  { %623 = vmatprep.subr.bf16.mxu0 %v1836_v16  ;;  %664 = vmatprep.subr.bf16.mxu1 %v1845_v19 }
 0x284   :  { %624 = vmatpush1.bf16.msra.mxu0 %v1839_v17  ;;  %665 = vmatpush1.bf16.msra.mxu1 %v1851_v21 }
 0x285   :  { %625 = vmatprep.subr.bf16.mxu0 %v1848_v20  ;;  %666 = vmatprep.subr.bf16.mxu1 %v1857_v23 }
 0x288   :  { %626 = vmatpush1.bf16.msra.mxu0 %v1855_v22  ;;  %667 = vmatpush1.bf16.msra.mxu1 %v1864_v26 }
 0x289   :  { %627 = vmatprep.subr.bf16.mxu0 %v1860_v24  ;;  %668 = vmatprep.subr.bf16.mxu1 %v1866_v27 }
 0x28c   :  { %628 = vmatpush1.bf16.msra.mxu0 %v1862_v25  ;;  %669 = vmatpush1.bf16.msra.mxu1 %v1874_v29 }
 0x28d   :  { %629 = vmatprep.subr.bf16.mxu0 %v1869_v28  ;;  %670 = vmatprep.subr.bf16.mxu1 %v1881_v32 }
 0x290   :  { %630 = vmatpush1.bf16.msra.mxu0 %v1876_v30  ;;  %671 = vmatpush1.bf16.msra.mxu1 %v1885_v34 }
 0x291   :  { %724 = vmatprep.subr.bf16.mxu0 %v1794_v1  ;;  %765 = vmatprep.subr.bf16.mxu1 %v1802_v4 }
 0x346   :  { %v540_v46 = vpop.f32.mrb[8].mxu0  ;;  %v581_v47 = vpop.f32.mrb[8].mxu1 }
 0x347   :  { %v588_v48 = vadd.f32 %v540_v46, %v501_v31  ;;  %v542_v49 = vpop.f32.mrb[9].mxu0  ;;  %v583_v50 = vpop.f32.mrb[9].mxu1  ;;  %v590_v59 = vadd.f32 %v581_v47, %v503_v51 }
 0x348   :  { %v589_v52 = vadd.f32 %v542_v49, %v502_v45  ;;  %v544_v53 = vpop.f32.mrb[10].mxu0  ;;  %v585_v54 = vpop.f32.mrb[10].mxu1  ;;  %v591_v61 = vadd.f32 %v583_v50, %v504_v60  ;;  %v611_v49 = vld [vmem:[#allocation2 + $0x68] sm:$0xff] }
 0x349   :  { %v592_v55 = vmul.f32 0.5, %v588_v48  ;;  %v545_v56 = vpop.f32.mrb[11].mxu0  ;;  %v586_v57 = vpop.f32.mrb[11].mxu1 }
 0x34a   :  { %v596_v58 = vmul.f32 0.5, %v589_v52  ;;  %v601_v62 = vmul.f32 0.5, %v591_v61 }
 0x34b   :  { %1446 = vtanh.f32 %v592_v55  ;;  %v612_v55 = vld [vmem:[#allocation2 + $0x70] sm:$0xff] }
 0x34c   :  { %1448 = vtanh.f32 %v596_v58 }
 0x34d   :  { %1450 = vtanh.f32 %v590_v59 }
 0x34e   :  { %1452 = vtanh.f32 %v601_v62 }
 0x355   :  { %v1447_v63 = vpop.eup %1446 }
 0x356   :  { %v1449_v33 = vpop.eup %1448  ;;  %v594_v35 = vadd.f32 1.0, %v1447_v63 }
 0x357   :  { %v598_v36 = vadd.f32 1.0, %v1449_v33  ;;  %v1451_v39 = vpop.eup %1450  ;;  %v613_v33 = vld [vmem:[#allocation2 + $0x78] sm:$0xff] }
 0x358   :  { %v595_v37 = vmul.f32 0.5, %v594_v35  ;;  %v1453_v44 = vpop.eup %1452 }
 0x359   :  { %v599_v40 = vmul.f32 0.5, %v598_v36  ;;  %v603_v31 = vadd.f32 1.0, %v1453_v44 }
 0x35a   :  { %v606_v41 = vmul.f32 %v1451_v39, %v595_v37 }
 0x35b   :  { %v605_v42 = vmul.f32 %v599_v40, %v1964_v38  ;;  %v604_v45 = vmul.f32 0.5, %v603_v31  ;;  %v610_v38 = vld [vmem:[#allocation2 + $0x60] sm:$0xff] }
 0x35d   :  { %v2002_v43 = vadd.f32 %v606_v41, %v605_v42 }
 0x35f   :  { %1454 = vtanh.f32 %v2002_v43 }
 0x369   :  { %v1455_v46 = vpop.eup %1454 }
 0x36a   :  { %v609_v47 = vmul.f32 %v1455_v46, %v604_v45 }
 0x36c   :  { %v614_v48 = vpack.c.bf16 %v609_v47, %v609_v47 }
 0x36e   :  { %648 = vmatmul.mubr.bf16.vlgmr.msra.gmra.mrb[12].mxu0 %v614_v48  ;;  %689 = vmatmul.mubr.bf16.vlgmr.msra.gmra.mrb[12].mxu1 %v614_v48 }
 0x36f   :  { %725 = vmatpush1.bf16.msra.mxu0 %v1796_v2  ;;  %766 = vmatpush1.bf16.msra.mxu1 %v1806_v6 }
 0x370   :  { %726 = vmatprep.subr.bf16.mxu0 %v1799_v3  ;;  %767 = vmatprep.subr.bf16.mxu1 %v1812_v8 }
 0x371   :  { %756 = vmatprep.mubr.bf16.mxu0 %v1686_v0  ;;  %797 = vmatprep.mubr.bf16.mxu1 %v1686_v0 }
 0x373   :  { %727 = vmatpush1.bf16.msra.mxu0 %v1804_v5  ;;  %768 = vmatpush1.bf16.msra.mxu1 %v1815_v9 }
 0x374   :  { %728 = vmatprep.subr.bf16.mxu0 %v1809_v7  ;;  %769 = vmatprep.subr.bf16.mxu1 %v1824_v12 }
 0x377   :  { %729 = vmatpush1.bf16.msra.mxu0 %v1819_v10  ;;  %770 = vmatpush1.bf16.msra.mxu1 %v1827_v13 }
 0x378   :  { %730 = vmatprep.subr.bf16.mxu0 %v1822_v11  ;;  %771 = vmatprep.subr.bf16.mxu1 %v1833_v15 }
 0x37b   :  { %731 = vmatpush1.bf16.msra.mxu0 %v1831_v14  ;;  %772 = vmatpush1.bf16.msra.mxu1 %v1841_v18 }
 0x37c   :  { %732 = vmatprep.subr.bf16.mxu0 %v1836_v16  ;;  %773 = vmatprep.subr.bf16.mxu1 %v1845_v19 }
 0x37f   :  { %733 = vmatpush1.bf16.msra.mxu0 %v1839_v17  ;;  %774 = vmatpush1.bf16.msra.mxu1 %v1851_v21 }
 0x380   :  { %734 = vmatprep.subr.bf16.mxu0 %v1848_v20  ;;  %775 = vmatprep.subr.bf16.mxu1 %v1857_v23 }
 0x383   :  { %735 = vmatpush1.bf16.msra.mxu0 %v1855_v22  ;;  %776 = vmatpush1.bf16.msra.mxu1 %v1864_v26 }
 0x384   :  { %736 = vmatprep.subr.bf16.mxu0 %v1860_v24  ;;  %777 = vmatprep.subr.bf16.mxu1 %v1866_v27 }
 0x387   :  { %737 = vmatpush1.bf16.msra.mxu0 %v1862_v25  ;;  %778 = vmatpush1.bf16.msra.mxu1 %v1874_v29 }
 0x388   :  { %738 = vmatprep.subr.bf16.mxu0 %v1869_v28  ;;  %779 = vmatprep.subr.bf16.mxu1 %v1881_v32 }
 0x38b   :  { %739 = vmatpush1.bf16.msra.mxu0 %v1876_v30  ;;  %780 = vmatpush1.bf16.msra.mxu1 %v1885_v34 }
 0x38c   :  { %833 = vmatprep.subr.bf16.mxu0 %v1794_v1  ;;  %874 = vmatprep.subr.bf16.mxu1 %v1802_v4 }
 0x441   :  { %v649_v50 = vpop.f32.mrb[12].mxu0  ;;  %v690_v51 = vpop.f32.mrb[12].mxu1 }
 0x442   :  { %v697_v52 = vadd.f32 %v649_v50, %v610_v38  ;;  %v651_v53 = vpop.f32.mrb[13].mxu0  ;;  %v692_v54 = vpop.f32.mrb[13].mxu1  ;;  %v699_v63 = vadd.f32 %v690_v51, %v612_v55 }
 0x443   :  { %v698_v56 = vadd.f32 %v651_v53, %v611_v49  ;;  %v653_v57 = vpop.f32.mrb[14].mxu0  ;;  %v694_v58 = vpop.f32.mrb[14].mxu1  ;;  %v700_v35 = vadd.f32 %v692_v54, %v613_v33  ;;  %v720_v53 = vld [vmem:[#allocation2 + $0x88] sm:$0xff] }
 0x444   :  { %v701_v59 = vmul.f32 0.5, %v697_v52  ;;  %v654_v60 = vpop.f32.mrb[15].mxu0  ;;  %v695_v61 = vpop.f32.mrb[15].mxu1 }
 0x445   :  { %v705_v62 = vmul.f32 0.5, %v698_v56  ;;  %v710_v36 = vmul.f32 0.5, %v700_v35 }
 0x446   :  { %1456 = vtanh.f32 %v701_v59  ;;  %v721_v59 = vld [vmem:[#allocation2 + $0x90] sm:$0xff] }
 0x447   :  { %1458 = vtanh.f32 %v705_v62 }
 0x448   :  { %1460 = vtanh.f32 %v699_v63 }
 0x449   :  { %1462 = vtanh.f32 %v710_v36 }
 0x450   :  { %v1457_v37 = vpop.eup %1456 }
 0x451   :  { %v1459_v39 = vpop.eup %1458  ;;  %v703_v40 = vadd.f32 1.0, %v1457_v37 }
 0x452   :  { %v707_v41 = vadd.f32 1.0, %v1459_v39  ;;  %v1461_v44 = vpop.eup %1460 }
 0x453   :  { %v704_v42 = vmul.f32 0.5, %v703_v40  ;;  %v1463_v48 = vpop.eup %1462 }
 0x454   :  { %v708_v31 = vmul.f32 0.5, %v707_v41  ;;  %v712_v38 = vadd.f32 1.0, %v1463_v48 }
 0x455   :  { %v715_v45 = vmul.f32 %v1461_v44, %v704_v42 }
 0x456   :  { %v714_v46 = vmul.f32 %v708_v31, %v2002_v43  ;;  %v713_v49 = vmul.f32 0.5, %v712_v38  ;;  %v719_v43 = vld [vmem:[#allocation2 + $0x80] sm:$0xff] }
 0x458   :  { %v2040_v47 = vadd.f32 %v715_v45, %v714_v46 }
 0x45a   :  { %1464 = vtanh.f32 %v2040_v47 }
 0x464   :  { %v1465_v50 = vpop.eup %1464 }
 0x465   :  { %v718_v51 = vmul.f32 %v1465_v50, %v713_v49 }
 0x467   :  { %v723_v52 = vpack.c.bf16 %v718_v51, %v718_v51 }
 0x469   :  { %757 = vmatmul.mubr.bf16.vlgmr.msra.gmra.mrb[16].mxu0 %v723_v52  ;;  %798 = vmatmul.mubr.bf16.vlgmr.msra.gmra.mrb[16].mxu1 %v723_v52 }
 0x46a   :  { %834 = vmatpush1.bf16.msra.mxu0 %v1796_v2  ;;  %875 = vmatpush1.bf16.msra.mxu1 %v1806_v6 }
 0x46b   :  { %835 = vmatprep.subr.bf16.mxu0 %v1799_v3  ;;  %876 = vmatprep.subr.bf16.mxu1 %v1812_v8 }
 0x46c   :  { %865 = vmatprep.mubr.bf16.mxu0 %v1686_v0  ;;  %906 = vmatprep.mubr.bf16.mxu1 %v1686_v0 }
 0x46e   :  { %836 = vmatpush1.bf16.msra.mxu0 %v1804_v5  ;;  %877 = vmatpush1.bf16.msra.mxu1 %v1815_v9 }
 0x46f   :  { %837 = vmatprep.subr.bf16.mxu0 %v1809_v7  ;;  %878 = vmatprep.subr.bf16.mxu1 %v1824_v12 }
 0x472   :  { %838 = vmatpush1.bf16.msra.mxu0 %v1819_v10  ;;  %879 = vmatpush1.bf16.msra.mxu1 %v1827_v13 }
 0x473   :  { %839 = vmatprep.subr.bf16.mxu0 %v1822_v11  ;;  %880 = vmatprep.subr.bf16.mxu1 %v1833_v15 }
 0x476   :  { %840 = vmatpush1.bf16.msra.mxu0 %v1831_v14  ;;  %881 = vmatpush1.bf16.msra.mxu1 %v1841_v18 }
 0x477   :  { %841 = vmatprep.subr.bf16.mxu0 %v1836_v16  ;;  %882 = vmatprep.subr.bf16.mxu1 %v1845_v19 }
 0x47a   :  { %842 = vmatpush1.bf16.msra.mxu0 %v1839_v17  ;;  %883 = vmatpush1.bf16.msra.mxu1 %v1851_v21 }
 0x47b   :  { %843 = vmatprep.subr.bf16.mxu0 %v1848_v20  ;;  %884 = vmatprep.subr.bf16.mxu1 %v1857_v23 }
 0x47e   :  { %844 = vmatpush1.bf16.msra.mxu0 %v1855_v22  ;;  %885 = vmatpush1.bf16.msra.mxu1 %v1864_v26 }
 0x47f   :  { %845 = vmatprep.subr.bf16.mxu0 %v1860_v24  ;;  %886 = vmatprep.subr.bf16.mxu1 %v1866_v27 }
 0x482   :  { %846 = vmatpush1.bf16.msra.mxu0 %v1862_v25  ;;  %887 = vmatpush1.bf16.msra.mxu1 %v1874_v29 }
 0x483   :  { %847 = vmatprep.subr.bf16.mxu0 %v1869_v28  ;;  %888 = vmatprep.subr.bf16.mxu1 %v1881_v32 }
 0x486   :  { %848 = vmatpush1.bf16.msra.mxu0 %v1876_v30  ;;  %889 = vmatpush1.bf16.msra.mxu1 %v1885_v34 }
 0x487   :  { %942 = vmatprep.subr.bf16.mxu0 %v1794_v1  ;;  %983 = vmatprep.subr.bf16.mxu1 %v1802_v4  ;;  %v722_v1 = vld [vmem:[#allocation2 + $0x98] sm:$0xff] }
 0x53c   :  { %v758_v54 = vpop.f32.mrb[16].mxu0  ;;  %v799_v55 = vpop.f32.mrb[16].mxu1 }
 0x53d   :  { %v806_v56 = vadd.f32 %v758_v54, %v719_v43  ;;  %v760_v57 = vpop.f32.mrb[17].mxu0  ;;  %v801_v58 = vpop.f32.mrb[17].mxu1  ;;  %v808_v37 = vadd.f32 %v799_v55, %v721_v59 }
 0x53e   :  { %v807_v60 = vadd.f32 %v760_v57, %v720_v53  ;;  %v762_v61 = vpop.f32.mrb[18].mxu0  ;;  %v803_v62 = vpop.f32.mrb[18].mxu1  ;;  %v809_v4 = vadd.f32 %v801_v58, %v722_v1  ;;  %v1512_v1 = vld [vmem:[#allocation8 + $0x20] ss:$16 sps:$4 sm:$0xff]  }
 0x53f   :  { %v810_v63 = vmul.f32 0.5, %v806_v56  ;;  %v763_v33 = vpop.f32.mrb[19].mxu0  ;;  %v804_v35 = vpop.f32.mrb[19].mxu1 }
 0x540   :  { %v814_v36 = vmul.f32 0.5, %v807_v60  ;;  %v819_v39 = vmul.f32 0.5, %v809_v4  ;;  %v1508_v33 = vld [vmem:[#allocation8] ss:$16 sps:$4 sm:$0xff]   ;;  %v1509_v35 = vld [vmem:[#allocation8 + $0x8] ss:$16 sps:$4 sm:$0xff]  }
 0x541   :  { %1466 = vtanh.f32 %v810_v63  ;;  %v1513_v4 = vld [vmem:[#allocation8 + $0x28] ss:$16 sps:$4 sm:$0xff]  }
 0x542   :  { %1468 = vtanh.f32 %v814_v36  ;;  %v1510_v36 = vld [vmem:[#allocation8 + $0x24] ss:$16 sps:$4 sm:$0xff]  }
 0x543   :  { %1470 = vtanh.f32 %v808_v37  ;;  %v1511_v37 = vld [vmem:[#allocation8 + $0x2c] ss:$16 sps:$4 sm:$0xff]  }
 0x544   :  { %1472 = vtanh.f32 %v819_v39  ;;  %v1514_v39 = vld [vmem:[#allocation8 + $0x44] ss:$16 sps:$4 sm:$0xff]  }
 0x54b   :  { %v1467_v40 = vpop.eup %1466 }
 0x54c   :  { %v1469_v41 = vpop.eup %1468  ;;  %v812_v42 = vadd.f32 1.0, %v1467_v40  ;;  %v1515_v40 = vld [vmem:[#allocation8 + $0x4c] ss:$16 sps:$4 sm:$0xff]  }
 0x54d   :  { %v816_v44 = vadd.f32 1.0, %v1469_v41  ;;  %v1471_v45 = vpop.eup %1470  ;;  %v1516_v41 = vld [vmem:[#allocation8 + $0x40] ss:$16 sps:$4 sm:$0xff]  }
 0x54e   :  { %v813_v31 = vmul.f32 0.5, %v812_v42  ;;  %v1473_v50 = vpop.eup %1472  ;;  %v1517_v42 = vld [vmem:[#allocation8 + $0x48] ss:$16 sps:$4 sm:$0xff]  }
 0x54f   :  { %v817_v46 = vmul.f32 0.5, %v816_v44  ;;  %v821_v51 = vadd.f32 1.0, %v1473_v50  ;;  %v1518_v44 = vld [vmem:[#allocation8 + $0x64] ss:$16 sps:$4 sm:$0xff]  }
 0x550   :  { %v824_v48 = vmul.f32 %v1471_v45, %v813_v31  ;;  %v1519_v31 = vld [vmem:[#allocation8 + $0x6c] ss:$16 sps:$4 sm:$0xff]   ;;  %v1520_v45 = vld [vmem:[#allocation8 + $0x60] ss:$16 sps:$4 sm:$0xff]   ;;  %v1526_v50 = vld [vmem:[#allocation8 + $0xa4] ss:$16 sps:$4 sm:$0xff]  }
 0x551   :  { %v823_v38 = vmul.f32 %v817_v46, %v2040_v47  ;;  %v822_v52 = vmul.f32 0.5, %v821_v51  ;;  %v1521_v46 = vld [vmem:[#allocation8 + $0x68] ss:$16 sps:$4 sm:$0xff]   ;;  %v1527_v51 = vld [vmem:[#allocation8 + $0xac] ss:$16 sps:$4 sm:$0xff]  }
 0x553   :  { %v2078_v49 = vadd.f32 %v824_v48, %v823_v38  ;;  %v1523_v48 = vld [vmem:[#allocation8 + $0x8c] ss:$16 sps:$4 sm:$0xff]   ;;  %v1524_v38 = vld [vmem:[#allocation8 + $0x80] ss:$16 sps:$4 sm:$0xff]  }
 0x555   :  { %1474 = vtanh.f32 %v2078_v49 }
 0x55f   :  { %v1475_v43 = vpop.eup %1474 }
 0x560   :  { %v827_v53 = vmul.f32 %v1475_v43, %v822_v52  ;;  %v1528_v52 = vld [vmem:[#allocation8 + $0xa0] ss:$16 sps:$4 sm:$0xff]   ;;  %v1529_v43 = vld [vmem:[#allocation8 + $0xa8] ss:$16 sps:$4 sm:$0xff]  }
 0x562   :  { %v832_v54 = vpack.c.bf16 %v827_v53, %v827_v53  ;;  %v1530_v53 = vld [vmem:[#allocation8 + $0xc4] ss:$16 sps:$4 sm:$0xff]  }
 0x564   :  { %866 = vmatmul.mubr.bf16.vlgmr.msra.gmra.mrb[20].mxu0 %v832_v54  ;;  %907 = vmatmul.mubr.bf16.vlgmr.msra.gmra.mrb[20].mxu1 %v832_v54  ;;  %v1531_v54 = vld [vmem:[#allocation8 + $0xcc] ss:$16 sps:$4 sm:$0xff]  }
 0x565   :  { %943 = vmatpush1.bf16.msra.mxu0 %v1796_v2  ;;  %984 = vmatpush1.bf16.msra.mxu1 %v1806_v6  ;;  %v1506_v2 = vld [vmem:[#allocation8 + $0x4] ss:$16 sps:$4 sm:$0xff]   ;;  %v829_v6 = vld [vmem:[#allocation2 + $0xa8] sm:$0xff] }
 0x566   :  { %944 = vmatprep.subr.bf16.mxu0 %v1799_v3  ;;  %985 = vmatprep.subr.bf16.mxu1 %v1812_v8  ;;  %v1507_v3 = vld [vmem:[#allocation8 + $0xc] ss:$16 sps:$4 sm:$0xff]  }
 0x567   :  { %974 = vmatprep.mubr.bf16.mxu0 %v1686_v0  ;;  %1015 = vmatprep.mubr.bf16.mxu1 %v1686_v0 }
 0x569   :  { %945 = vmatpush1.bf16.msra.mxu0 %v1804_v5  ;;  %986 = vmatpush1.bf16.msra.mxu1 %v1815_v9  ;;  %v828_v5 = vld [vmem:[#allocation2 + $0xa0] sm:$0xff] }
 0x56a   :  { %946 = vmatprep.subr.bf16.mxu0 %v1809_v7  ;;  %987 = vmatprep.subr.bf16.mxu1 %v1824_v12  ;;  %v830_v12 = vld [vmem:[#allocation2 + $0xb0] sm:$0xff] }
 0x56d   :  { %947 = vmatpush1.bf16.msra.mxu0 %v1819_v10  ;;  %988 = vmatpush1.bf16.msra.mxu1 %v1827_v13 }
 0x56e   :  { %948 = vmatprep.subr.bf16.mxu0 %v1822_v11  ;;  %989 = vmatprep.subr.bf16.mxu1 %v1833_v15 }
 0x571   :  { %949 = vmatpush1.bf16.msra.mxu0 %v1831_v14  ;;  %990 = vmatpush1.bf16.msra.mxu1 %v1841_v18 }
 0x572   :  { %950 = vmatprep.subr.bf16.mxu0 %v1836_v16  ;;  %991 = vmatprep.subr.bf16.mxu1 %v1845_v19 }
 0x575   :  { %951 = vmatpush1.bf16.msra.mxu0 %v1839_v17  ;;  %992 = vmatpush1.bf16.msra.mxu1 %v1851_v21  ;;  %v831_v21 = vld [vmem:[#allocation2 + $0xb8] sm:$0xff] }
 0x576   :  { %952 = vmatprep.subr.bf16.mxu0 %v1848_v20  ;;  %993 = vmatprep.subr.bf16.mxu1 %v1857_v23 }
 0x579   :  { %953 = vmatpush1.bf16.msra.mxu0 %v1855_v22  ;;  %994 = vmatpush1.bf16.msra.mxu1 %v1864_v26 }
 0x57a   :  { %954 = vmatprep.subr.bf16.mxu0 %v1860_v24  ;;  %995 = vmatprep.subr.bf16.mxu1 %v1866_v27 }
 0x57d   :  { %955 = vmatpush1.bf16.msra.mxu0 %v1862_v25  ;;  %996 = vmatpush1.bf16.msra.mxu1 %v1874_v29 }
 0x57e   :  { %956 = vmatprep.subr.bf16.mxu0 %v1869_v28  ;;  %997 = vmatprep.subr.bf16.mxu1 %v1881_v32 }
 0x581   :  { %957 = vmatpush1.bf16.msra.mxu0 %v1876_v30  ;;  %998 = vmatpush1.bf16.msra.mxu1 %v1885_v34 }
 0x582   :  { %1051 = vmatprep.subr.bf16.mxu0 %v1506_v2  ;;  %1092 = vmatprep.subr.bf16.mxu1 %v1507_v3  ;;  %v1532_v2 = vld [vmem:[#allocation8 + $0xc0] ss:$16 sps:$4 sm:$0xff]   ;;  %v1533_v3 = vld [vmem:[#allocation8 + $0xc8] ss:$16 sps:$4 sm:$0xff]  }
 0x637   :  { %v867_v7 = vpop.f32.mrb[20].mxu0  ;;  %v908_v8 = vpop.f32.mrb[20].mxu1 }
 0x638   :  { %v915_v9 = vadd.f32 %v867_v7, %v828_v5  ;;  %v869_v10 = vpop.f32.mrb[21].mxu0  ;;  %v910_v11 = vpop.f32.mrb[21].mxu1  ;;  %v917_v20 = vadd.f32 %v908_v8, %v830_v12  ;;  %v1534_v5 = vld [vmem:[#allocation8 + $0xe4] ss:$16 sps:$4 sm:$0xff]   ;;  %v938_v7 = vld [vmem:[#allocation2 + $0xc8] sm:$0xff] }
 0x639   :  { %v916_v13 = vadd.f32 %v869_v10, %v829_v6  ;;  %v871_v14 = vpop.f32.mrb[22].mxu0  ;;  %v912_v15 = vpop.f32.mrb[22].mxu1  ;;  %v918_v22 = vadd.f32 %v910_v11, %v831_v21  ;;  %v937_v6 = vld [vmem:[#allocation2 + $0xc0] sm:$0xff] }
 0x63a   :  { %v919_v16 = vmul.f32 0.5, %v915_v9  ;;  %v872_v17 = vpop.f32.mrb[23].mxu0  ;;  %v913_v18 = vpop.f32.mrb[23].mxu1 }
 0x63b   :  { %v923_v19 = vmul.f32 0.5, %v916_v13  ;;  %v928_v23 = vmul.f32 0.5, %v918_v22  ;;  %v939_v13 = vld [vmem:[#allocation2 + $0xd0] sm:$0xff] }
 0x63c   :  { %1476 = vtanh.f32 %v919_v16 }
 0x63d   :  { %1478 = vtanh.f32 %v923_v19 }
 0x63e   :  { %1480 = vtanh.f32 %v917_v20 }
 0x63f   :  { %1482 = vtanh.f32 %v928_v23 }
 0x646   :  { %v1477_v24 = vpop.eup %1476 }
 0x647   :  { %v1479_v25 = vpop.eup %1478  ;;  %v921_v26 = vadd.f32 1.0, %v1477_v24 }
 0x648   :  { %v925_v27 = vadd.f32 1.0, %v1479_v25  ;;  %v1481_v29 = vpop.eup %1480 }
 0x649   :  { %v922_v28 = vmul.f32 0.5, %v921_v26  ;;  %v1483_v58 = vpop.eup %1482 }
 0x64a   :  { %v926_v47 = vmul.f32 0.5, %v925_v27  ;;  %v930_v59 = vadd.f32 1.0, %v1483_v58 }
 0x64b   :  { %v933_v55 = vmul.f32 %v1481_v29, %v922_v28 }
 0x64c   :  { %v932_v56 = vmul.f32 %v926_v47, %v2078_v49  ;;  %v931_v60 = vmul.f32 0.5, %v930_v59  ;;  %v1525_v49 = vld [vmem:[#allocation8 + $0x88] ss:$16 sps:$4 sm:$0xff]  }
 0x64e   :  { %v2114_v57 = vadd.f32 %v933_v55, %v932_v56 }
 0x650   :  { %1484 = vtanh.f32 %v2114_v57 }
 0x65a   :  { %v1485_v61 = vpop.eup %1484 }
 0x65b   :  { %v936_v62 = vmul.f32 %v1485_v61, %v931_v60 }
 0x65d   :  { %v941_v63 = vpack.c.bf16 %v936_v62, %v936_v62 }
 0x65f   :  { %975 = vmatmul.mubr.bf16.vlgmr.msra.gmra.mrb[24].mxu0 %v941_v63  ;;  %1016 = vmatmul.mubr.bf16.vlgmr.msra.gmra.mrb[24].mxu1 %v941_v63  ;;  %v1418_v63 = vld [vmem:[#allocation10] sm:$0xff]  }
 0x660   :  { %1052 = vmatpush1.bf16.msra.mxu0 %v1508_v33  ;;  %1093 = vmatpush1.bf16.msra.mxu1 %v1509_v35  ;;  %v1687_v33 = vmov 0.0   ;;  %v1419_v35 = vld [vmem:[#allocation10 + $0x8] sm:$0xff]  }
 0x661   :  { %1053 = vmatprep.subr.bf16.mxu0 %v1510_v36  ;;  %1094 = vmatprep.subr.bf16.mxu1 %v1511_v37  ;;  %v1421_v36 = vld [vmem:[#allocation10 + $0x18] sm:$0xff]   ;;  %v1422_v37 = vld [vmem:[#allocation10 + $0x20] sm:$0xff]  }
 0x662   :  { %1083 = vmatprep.mubr.bf16.mxu0 %v1686_v0  ;;  %1124 = vmatprep.mubr.bf16.mxu1 %v1686_v0  ;;  %v1522_v0 = vld [vmem:[#allocation8 + $0x84] ss:$16 sps:$4 sm:$0xff]  }
 0x664   :  { %1054 = vmatpush1.bf16.msra.mxu0 %v1512_v1  ;;  %1095 = vmatpush1.bf16.msra.mxu1 %v1513_v4  ;;  %v1423_v1 = vld [vmem:[#allocation10 + $0x28] sm:$0xff]   ;;  %v1424_v4 = vld [vmem:[#allocation10 + $0x30] sm:$0xff]  }
 0x665   :  { %1055 = vmatprep.subr.bf16.mxu0 %v1514_v39  ;;  %1096 = vmatprep.subr.bf16.mxu1 %v1515_v40  ;;  %v1425_v39 = vld [vmem:[#allocation10 + $0x38] sm:$0xff]   ;;  %v1046_v40 = vld [vmem:[#allocation2 + $0xe0] sm:$0xff] }
 0x668   :  { %1056 = vmatpush1.bf16.msra.mxu0 %v1516_v41  ;;  %1097 = vmatpush1.bf16.msra.mxu1 %v1517_v42  ;;  %v1047_v41 = vld [vmem:[#allocation2 + $0xe8] sm:$0xff] }
 0x669   :  { %1057 = vmatprep.subr.bf16.mxu0 %v1518_v44  ;;  %1098 = vmatprep.subr.bf16.mxu1 %v1519_v31 }
 0x66c   :  { %1058 = vmatpush1.bf16.msra.mxu0 %v1520_v45  ;;  %1099 = vmatpush1.bf16.msra.mxu1 %v1521_v46 }
 0x66d   :  { %1059 = vmatprep.subr.bf16.mxu0 %v1522_v0  ;;  %1100 = vmatprep.subr.bf16.mxu1 %v1523_v48  ;;  %v1048_v0 = vld [vmem:[#allocation2 + $0xf0] sm:$0xff] }
 0x670   :  { %1060 = vmatpush1.bf16.msra.mxu0 %v1524_v38  ;;  %1101 = vmatpush1.bf16.msra.mxu1 %v1525_v49 }
 0x671   :  { %1061 = vmatprep.subr.bf16.mxu0 %v1526_v50  ;;  %1102 = vmatprep.subr.bf16.mxu1 %v1527_v51 }
 0x674   :  { %1062 = vmatpush1.bf16.msra.mxu0 %v1528_v52  ;;  %1103 = vmatpush1.bf16.msra.mxu1 %v1529_v43 }
 0x675   :  { %1063 = vmatprep.subr.bf16.mxu0 %v1530_v53  ;;  %1104 = vmatprep.subr.bf16.mxu1 %v1531_v54  ;;  %v1049_v54 = vld [vmem:[#allocation2 + $0xf8] sm:$0xff] }
 0x678   :  { %1064 = vmatpush1.bf16.msra.mxu0 %v1532_v2  ;;  %1105 = vmatpush1.bf16.msra.mxu1 %v1533_v3 }
 0x679   :  { %1065 = vmatprep.subr.bf16.mxu0 %v1534_v5  ;;  %1106 = vmatprep.subr.bf16.mxu1 %v1881_v32 }
 0x67c   :  { %1066 = vmatpush1.bf16.msra.mxu0 %v1876_v30  ;;  %1107 = vmatpush1.bf16.msra.mxu1 %v1885_v34  ;;  %v940_v30 = vld [vmem:[#allocation2 + $0xd8] sm:$0xff] }
 0x67d   :  { %1335 = vmatprep.subr.bf16.mxu0 %v1687_v33 }
 0x732   :  { %v976_v8 = vpop.f32.mrb[24].mxu0  ;;  %v1017_v9 = vpop.f32.mrb[24].mxu1 }
 0x733   :  { %v1024_v10 = vadd.f32 %v976_v8, %v937_v6  ;;  %v978_v11 = vpop.f32.mrb[25].mxu0  ;;  %v1019_v12 = vpop.f32.mrb[25].mxu1  ;;  %v1026_v32 = vadd.f32 %v1017_v9, %v939_v13 }
 0x734   :  { %v1025_v14 = vadd.f32 %v978_v11, %v938_v7  ;;  %v980_v15 = vpop.f32.mrb[26].mxu0  ;;  %v1021_v16 = vpop.f32.mrb[26].mxu1  ;;  %v1027_v34 = vadd.f32 %v1019_v12, %v940_v30 }
 0x735   :  { %v1028_v17 = vmul.f32 0.5, %v1024_v10  ;;  %v981_v18 = vpop.f32.mrb[27].mxu0  ;;  %v1022_v19 = vpop.f32.mrb[27].mxu1 }
 0x736   :  { %v1032_v20 = vmul.f32 0.5, %v1025_v14  ;;  %v1037_v21 = vmul.f32 0.5, %v1027_v34 }
 0x737   :  { %1486 = vtanh.f32 %v1028_v17 }
 0x738   :  { %1488 = vtanh.f32 %v1032_v20 }
 0x739   :  { %1490 = vtanh.f32 %v1026_v32  ;;  %v1317_v32 = vld [vmem:[%s2147_s5] ss:$0 sm:$0xff] }
 0x73a   :  { %1492 = vtanh.f32 %v1037_v21 }
 0x741   :  { %v1487_v22 = vpop.eup %1486 }
 0x742   :  { %v1489_v23 = vpop.eup %1488  ;;  %v1030_v24 = vadd.f32 1.0, %v1487_v22 }
 0x743   :  { %v1034_v25 = vadd.f32 1.0, %v1489_v23  ;;  %v1491_v27 = vpop.eup %1490 }
 0x744   :  { %v1031_v26 = vmul.f32 0.5, %v1030_v24  ;;  %v1493_v56 = vpop.eup %1492 }
 0x745   :  { %v1035_v28 = vmul.f32 0.5, %v1034_v25  ;;  %v1039_v58 = vadd.f32 1.0, %v1493_v56 }
 0x746   :  { %v1042_v29 = vmul.f32 %v1491_v27, %v1031_v26 }
 0x747   :  { %v1041_v47 = vmul.f32 %v1035_v28, %v2114_v57  ;;  %v1040_v59 = vmul.f32 0.5, %v1039_v58  ;;  %v1420_v57 = vld [vmem:[#allocation10 + $0x10] sm:$0xff]  }
 0x749   :  { %v2123_v55 = vadd.f32 %v1042_v29, %v1041_v47 }
 0x74b   :  { %1494 = vtanh.f32 %v2123_v55 }
 0x755   :  { %v1495_v60 = vpop.eup %1494 }
 0x756   :  { %v1045_v61 = vmul.f32 %v1495_v60, %v1040_v59 }
 0x758   :  { %v1050_v62 = vpack.c.bf16 %v1045_v61, %v1045_v61 }
 0x75a   :  { %1084 = vmatmul.mubr.bf16.vlgmr.msra.gmra.mrb[28].mxu0 %v1050_v62  ;;  %1125 = vmatmul.mubr.bf16.vlgmr.msra.gmra.mrb[28].mxu1 %v1050_v62 }
 0x75b   :  { %1336 = vmatpush3.bf16.msra.mxu0 %v1418_v63  ;;  %1351 = vmatprep.mubr.msk.bf16.mxu0 %vm1688_vm0, %v1687_v33 }
 0x75c   :  { %1337 = vmatprep.subr.bf16.mxu0 %v1687_v33 }
 0x75f   :  { %1338 = vmatpush3.bf16.msra.mxu0 %v1419_v35 }
 0x760   :  { %1339 = vmatprep.subr.bf16.mxu0 %v1687_v33 }
 0x763   :  { %1340 = vmatpush3.bf16.msra.mxu0 %v1420_v57 }
 0x764   :  { %1341 = vmatprep.subr.bf16.mxu0 %v1687_v33 }
 0x767   :  { %1342 = vmatpush3.bf16.msra.mxu0 %v1421_v36 }
 0x768   :  { %1343 = vmatprep.subr.bf16.mxu0 %v1687_v33 }
 0x76b   :  { %1344 = vmatpush3.bf16.msra.mxu0 %v1422_v37 }
 0x76c   :  { %1345 = vmatprep.subr.bf16.mxu0 %v1687_v33 }
 0x76f   :  { %1346 = vmatpush3.bf16.msra.mxu0 %v1423_v1 }
 0x770   :  { %1347 = vmatprep.subr.bf16.mxu0 %v1687_v33 }
 0x773   :  { %1348 = vmatpush3.bf16.msra.mxu0 %v1424_v4 }
 0x774   :  { %1349 = vmatprep.subr.bf16.mxu0 %v1687_v33 }
 0x777   :  { %1350 = vmatpush3.bf16.msra.mxu0 %v1425_v39 }
 0x82d   :  { %v1085_v42 = vpop.f32.mrb[28].mxu0  ;;  %v1126_v44 = vpop.f32.mrb[28].mxu1 }
 0x82e   :  { %v1133_v31 = vadd.f32 %v1085_v42, %v1046_v40  ;;  %v1087_v45 = vpop.f32.mrb[29].mxu0  ;;  %v1128_v46 = vpop.f32.mrb[29].mxu1  ;;  %v1135_v53 = vadd.f32 %v1126_v44, %v1048_v0 }
 0x82f   :  { %v1134_v48 = vadd.f32 %v1087_v45, %v1047_v41  ;;  %v1089_v38 = vpop.f32.mrb[30].mxu0  ;;  %v1130_v49 = vpop.f32.mrb[30].mxu1  ;;  %v1136_v2 = vadd.f32 %v1128_v46, %v1049_v54 }
 0x830   :  { %v1137_v50 = vmul.f32 0.5, %v1133_v31  ;;  %v1090_v51 = vpop.f32.mrb[31].mxu0  ;;  %v1131_v52 = vpop.f32.mrb[31].mxu1 }
 0x831   :  { %v1141_v43 = vmul.f32 0.5, %v1134_v48  ;;  %v1146_v3 = vmul.f32 0.5, %v1136_v2 }
 0x832   :  { %1496 = vtanh.f32 %v1137_v50 }
 0x833   :  { %1498 = vtanh.f32 %v1141_v43 }
 0x834   :  { %1500 = vtanh.f32 %v1135_v53 }
 0x835   :  { %1502 = vtanh.f32 %v1146_v3 }
 0x83c   :  { %v1497_v5 = vpop.eup %1496 }
 0x83d   :  { %v1499_v6 = vpop.eup %1498  ;;  %v1139_v7 = vadd.f32 1.0, %v1497_v5 }
 0x83e   :  { %v1143_v8 = vadd.f32 1.0, %v1499_v6  ;;  %v1501_v10 = vpop.eup %1500 }
 0x83f   :  { %v1140_v9 = vmul.f32 0.5, %v1139_v7  ;;  %v1503_v15 = vpop.eup %1502 }
 0x840   :  { %v1144_v11 = vmul.f32 0.5, %v1143_v8  ;;  %v1148_v16 = vadd.f32 1.0, %v1503_v15 }
 0x841   :  { %v1151_v12 = vmul.f32 %v1501_v10, %v1140_v9 }
 0x842   :  { %v1150_v13 = vmul.f32 %v1144_v11, %v2123_v55  ;;  %v1149_v17 = vmul.f32 0.5, %v1148_v16 }
 0x844   :  { %v1152_v14 = vadd.f32 %v1151_v12, %v1150_v13 }
 0x846   :  { %1504 = vtanh.f32 %v1152_v14 }
 0x850   :  { %v1505_v18 = vpop.eup %1504 }
 0x851   :  { %v1154_v19 = vmul.f32 %v1505_v18, %v1149_v17 }
 0x853   :  { %v1155_v20 = vpack.c.bf16 %v1154_v19, %v1154_v19 }
 0x855   :  { %1352 = vmatmul.mubr.bf16.vlgmr.msra.gmra.mrb[32].mxu0 %v1155_v20 }
 0x928   :  { %v1261_v30 = vpop.f32.mrb[32].mxu0 }
 0x929   :  { %v1262_v34 = vadd.f32 %v1317_v32, %v1261_v30  ;;  %v1353_v21 = vpop.f32.mrb[33].mxu0 }
 0x92a   :  { %v1264_v22 = vpop.f32.mrb[34].mxu0 }
 0x92b   :  { %1267 = vst [vmem:[#allocation11] sm:$0xff] %v1262_v34  ;;  %v1354_v23 = vpop.f32.mrb[35].mxu0 }
 0x92c   :  { %1656 = shalt.err (!%p1653_p2)
}
 0x92d   :  { %s1657_s5 = scalar_lea.hbm %s2148_s6, 128 }
 0x92e   :  { %p1658_p3 = scmp.ne.s32.totalorder %s2148_s6, %s1657_s5  ;;  %p1661_p4 = scmp.lt.u32.totalorder %s1657_s5, %s2148_s6 }
 0x930   :  { %p1663_p5 = pnand %p1661_p4, %p1658_p3 }
 0x932   :  { %1666 = shalt.err (!%p1663_p5)
}
 0x933   :  { %1277 = dma.vmem_to_hbm [thread:$0]  %s1275_s11, 128, %s2148_s6, [#allocation4]  }
 0x934   :  { %1673 = dma.done.wait [#allocation4], 128  }
 0x935   :  { %1674 = vsyncadd [#allocation4], 4294967168 }
 0x936   :  { %1281 = vsyncpa [#allocation3], 1 }
 0x937   :  { %1282 = vsyncpa [#allocation6], 1 }
 0x938   :  { %1283 = vsyncpa [#allocation9], 1 }
 0x939   :  { %1284 = vsyncpa [#allocation4], 1 }

</bundles_post_ra>
